<compile_context>
chip_gen: v7x
topology: tpu7x:2x2x1
jax: 0.10.0
libtpu: 0.0.40
codegen_flags: <defaults>
</compile_context>

<pallas_src>
import functools
import re

import jax
import jax.numpy as jnp
from jax import lax
from jax.experimental import pallas as pl
from jax.experimental.pallas import tpu as pltpu


# ---------------------------------------------------------------------------
# Hardware introspection (cheap, cached)
# ---------------------------------------------------------------------------
@functools.lru_cache(maxsize=None)
def _chip_generation():
    try:
        kind = jax.devices()[0].device_kind
    except Exception:
        return 0
    m = re.search(r"v(\d+)", kind.lower())
    return int(m.group(1)) if m else 0


@functools.lru_cache(maxsize=None)
def _vmem_capacity_bytes():
    # Prefer the Pallas hardware query; fall back to a per-generation table.
    try:
        info = pltpu.get_tpu_info()
        for name in ("vmem_capacity_bytes", "vmem_size_bytes"):
            v = getattr(info, name, None)
            if v:
                return int(v)
    except Exception:
        pass
    gen = _chip_generation()
    if gen >= 7:
        return 64 * 1024 * 1024     # v7x: 64 MiB per TensorCore
    if gen in (5, 6):
        return 128 * 1024 * 1024    # v5e / v6e
    return 32 * 1024 * 1024         # unknown / older: stay conservative


@functools.lru_cache(maxsize=None)
def _single_buffer_kwarg_available():
    """Construction-time feature probe for BlockSpec(pipeline_mode=Buffered(1))."""
    if not hasattr(pl, "Buffered"):
        return False
    try:
        pl.BlockSpec((8, 128), lambda i: (0, 0), pipeline_mode=pl.Buffered(1))
        return True
    except TypeError:
        return False


# Flipped once (and remembered) only if Buffered(1) fails to *lower* on this
# jax/libtpu combination.  Narrow: only pltpu.LoweringException is caught.
_SINGLE_BUFFER_LOWERS = {"ok": True}


# ---------------------------------------------------------------------------
# Batch-tile picker
# ---------------------------------------------------------------------------
def _pick_block_b(B, input_dim, hidden_dim, out_dim, w_dsize, x_dsize,
                  vmem_budget_bytes, min_grid_steps):
    """Largest aligned divisor of B that fits the VMEM budget."""
    row_mult = 8 if x_dsize >= 4 else 16            # sublane multiple for the x tile
    w_bytes = (input_dim * hidden_dim + hidden_dim * hidden_dim
               + hidden_dim * out_dim) * w_dsize    # weights, single-buffered
    per_row = (2 * input_dim * x_dsize              # x tile, double-buffered
               + 2 * max(out_dim, 1) * 4            # out tile, double-buffered (f32)
               + 3 * hidden_dim * 4)                # h1/h2 f32 intermediates + slack
    budget_rows = max(row_mult, (vmem_budget_bytes - w_bytes) // per_row)
    cap = int(min(B, budget_rows))
    # Keep >= min_grid_steps steps (pipelining; v7x core sharding) as long as
    # tiles stay >= 128 rows.
    if B >= min_grid_steps * 128:
        cap = min(cap, B // min_grid_steps)
    cap = max(cap, 1)

    best, best_key = None, None
    d = 1
    while d * d <= B:
        if B % d == 0:
            for cand in (d, B // d):
                if cand > cap:
                    continue
                aligned = (cand % row_mult == 0) or (cand == B)
                key = (aligned, cand % 256 == 0, cand % 128 == 0, cand)
                if best_key is None or key > best_key:
                    best, best_key = cand, key
        d += 1
    if best is None:
        best = B
    # A sub-batch tile whose row count is not a sublane multiple violates the
    # (8, 128) block-shape rule; fall back to one full-batch block instead.
    if best != B and best % row_mult != 0:
        best = B
    return best


# ---------------------------------------------------------------------------
# Kernel
# ---------------------------------------------------------------------------
def _mlp_kernel(x_ref, w1_ref, w2_ref, w3_ref, o_ref, *,
                s1, s2, s3, mode, compute_dtype):
    # In-kernel cast of the activation tile (VPU, hides in slack slots) instead
    # of a separate wrapper-side XLA cast pass over the whole batch.
    x = x_ref[...].astype(compute_dtype)

    # NTK 1/sqrt scales are applied to the f32 accumulators (scalar multiply,
    # free filler); relu commutes with a positive scale.
    h1 = jnp.dot(x, w1_ref[...], preferred_element_type=jnp.float32)
    h1 = jnp.maximum(h1 * s1, 0.0)

    h2 = jnp.dot(h1.astype(compute_dtype), w2_ref[...],
                 preferred_element_type=jnp.float32)
    h2 = jnp.maximum(h2 * s2, 0.0)

    if mode == "lane_dense":
        # w3_ref is [1, hidden]; contract hidden-with-hidden so the result is a
        # lane-dense [1, block_b] slab (unmasked vst, contiguous HBM writeback).
        y = lax.dot_general(w3_ref[...].astype(jnp.float32), h2,
                            dimension_numbers=(((1,), (1,)), ((), ())),
                            preferred_element_type=jnp.float32)
    elif mode == "col":
        # Fallback when block_b is not 128-aligned: VPU multiply + lane reduce.
        y = jnp.sum(h2 * w3_ref[...].astype(jnp.float32), axis=-1, keepdims=True)
    else:  # "matmul": general out_dim
        y = jnp.dot(h2.astype(compute_dtype), w3_ref[...],
                    preferred_element_type=jnp.float32)
    o_ref[...] = (y * s3).astype(o_ref.dtype)


# ---------------------------------------------------------------------------
# Wrapper
# ---------------------------------------------------------------------------
def mlp_forward(x, w1, w2, w3, *, block_b=None, compute_dtype=None):
    """NTK-parameterized MLP forward.

    x : [B, input_dim]
    w1: [hidden_dim, input_dim]   (PyTorch nn.Linear layout)
    w2: [hidden_dim, hidden_dim]
    w3: [out_dim,   hidden_dim]
    """
    B, input_dim = x.shape
    hidden_dim = w1.shape[0]
    out_dim = w3.shape[0]
    out_dtype = x.dtype

    gen = _chip_generation()
    vmem_cap = _vmem_capacity_bytes()
    vmem_budget = int(0.55 * vmem_cap)       # tile-picking budget
    vmem_limit_cap = int(0.70 * vmem_cap)    # hard Mosaic limit (headroom kept)

    if compute_dtype is None:
        # bf16 MXU operands on v6e/v7x (f32 accumulation + f32 epilogue kept).
        compute_dtype = (jnp.bfloat16
                         if (gen >= 6 and x.dtype == jnp.float32)
                         else x.dtype)
    w_dsize = jnp.dtype(compute_dtype).itemsize
    x_dsize = jnp.dtype(x.dtype).itemsize

    # Weights must fit a single VMEM block for this fused kernel.
    w_bytes = (input_dim * hidden_dim + hidden_dim * hidden_dim
               + hidden_dim * out_dim) * w_dsize
    if w_bytes > vmem_budget:
        # TODO(synk): tile the hidden dimension (extra "arbitrary" grid axis +
        # f32 accumulator scratch) instead of failing for very large hidden_dim.
        raise ValueError(
            f"weights ({w_bytes} B) exceed the VMEM budget ({vmem_budget} B); "
            "hidden-dim tiling not implemented")

    if block_b is None:
        min_steps = 4 if gen >= 7 else 2     # v7x: 2 TCs share the batch axis
        block_b = _pick_block_b(B, input_dim, hidden_dim, out_dim,
                                w_dsize, x_dsize, vmem_budget, min_steps)
    assert B % block_b == 0, (B, block_b)
    grid = (B // block_b,)

    # Lane-dense output only needs block_b to obey the lane-dim rule.
    lane_dense = (out_dim == 1) and (block_b % 128 == 0 or block_b == B)
    mode = ("lane_dense" if lane_dense else "col") if out_dim == 1 else "matmul"

    # One-time weight layout prep: transpose + cast only (NTK scalars are
    # applied inside the kernel, so traced weights pay no extra HBM passes).
    w1t = w1.T.astype(compute_dtype)                     # [in, hidden]
    w2t = w2.T.astype(compute_dtype)                     # [hidden, hidden]
    if out_dim == 1:
        w3c = w3.astype(compute_dtype)                   # [1, hidden] lane-dense row
        w3_shape = (1, hidden_dim)
    else:
        w3c = w3.T.astype(compute_dtype)                 # [hidden, out]
        w3_shape = (hidden_dim, out_dim)

    s1 = float(1.0 / (input_dim ** 0.5))
    s2 = float(1.0 / (hidden_dim ** 0.5))
    s3 = float(1.0 / (hidden_dim ** 0.5))

    if lane_dense:
        out_shape = jax.ShapeDtypeStruct((1, B), out_dtype)
        out_spec = pl.BlockSpec((1, block_b), lambda i: (0, i))
        out_row_bytes = 4
    else:
        out_shape = jax.ShapeDtypeStruct((B, out_dim), out_dtype)
        out_spec = pl.BlockSpec((block_b, out_dim), lambda i: (i, 0))
        out_row_bytes = out_dim * 4

    kernel = functools.partial(_mlp_kernel, s1=s1, s2=s2, s3=s3, mode=mode,
                               compute_dtype=compute_dtype)

    flops = 2 * B * hidden_dim * (input_dim + hidden_dim + out_dim)
    bytes_accessed = (x.size * x_dsize
                      + (w1t.size + w2t.size + w3c.size) * w_dsize
                      + B * out_dim * jnp.dtype(out_dtype).itemsize)
    cost = pl.CostEstimate(flops=flops, transcendentals=0,
                           bytes_accessed=bytes_accessed)

    def build(single_buffer_weights):
        def w_spec(shape):
            if single_buffer_weights:
                # Constant block across the batch grid: no double buffering.
                return pl.BlockSpec(shape, lambda i: (0, 0),
                                    pipeline_mode=pl.Buffered(1))
            return pl.BlockSpec(shape, lambda i: (0, 0))

        wb_mult = 1 if single_buffer_weights else 2
        need = (wb_mult * w_bytes
                + 2 * block_b * input_dim * x_dsize      # x tile, double-buffered
                + 2 * block_b * out_row_bytes            # out tile, double-buffered
                + 3 * block_b * hidden_dim * 4)          # f32 intermediates
        vmem_limit = int(min(max(int(need * 1.3), min(32 << 20, vmem_limit_cap)),
                             vmem_limit_cap))

        return pl.pallas_call(
            kernel,
            out_shape=out_shape,
            grid_spec=pltpu.PrefetchScalarGridSpec(
                num_scalar_prefetch=0,
                grid=grid,
                in_specs=[
                    pl.BlockSpec((block_b, input_dim), lambda i: (i, 0)),
                    w_spec((input_dim, hidden_dim)),
                    w_spec((hidden_dim, hidden_dim)),
                    w_spec(w3_shape),
                ],
                out_specs=out_spec,
            ),
            compiler_params=pltpu.CompilerParams(
                dimension_semantics=("parallel",),
                vmem_limit_bytes=vmem_limit,
            ),
            cost_estimate=cost,
        )

    use_single = _single_buffer_kwarg_available() and _SINGLE_BUFFER_LOWERS["ok"]
    if use_single:
        try:
            out = build(True)(x, w1t, w2t, w3c)
        except pltpu.LoweringException:
            _SINGLE_BUFFER_LOWERS["ok"] = False       # remember; don't retry per call
            out = build(False)(x, w1t, w2t, w3c)
    else:
        out = build(False)(x, w1t, w2t, w3c)

    if lane_dense:
        out = out.reshape(B, 1)
    return out


def mlp_reference(x, w1, w2, w3):
    input_dim = x.shape[1]
    hidden_dim = w1.shape[0]
    h1 = jax.nn.relu(x @ w1.T / (input_dim ** 0.5))
    h2 = jax.nn.relu(h1 @ w2.T / (hidden_dim ** 0.5))
    return (h2 @ w3.T) / (hidden_dim ** 0.5)


if __name__ == "__main__":
    # Small shapes consistent with the module (hidden_dim=128, out_dim=1);
    # B chosen so the batch grid has multiple steps on every generation.
    B = 512
    input_dim = 512
    hidden_dim = 128
    out_dim = 1

    key = jax.random.PRNGKey(0)
    kx, k1, k2, k3 = jax.random.split(key, 4)

    x = jax.random.normal(kx, (B, input_dim), dtype=jnp.float32)
    # reset_parameters (ntk): normal(std=0.3) for all three weights.
    w1 = 0.3 * jax.random.normal(k1, (hidden_dim, input_dim), dtype=jnp.float32)
    w2 = 0.3 * jax.random.normal(k2, (hidden_dim, hidden_dim), dtype=jnp.float32)
    w3 = 0.3 * jax.random.normal(k3, (out_dim, hidden_dim), dtype=jnp.float32)

    y_ref = mlp_reference(x, w1, w2, w3)

    # Explicit f32 MXU operands: tight correctness check.
    y_f32 = jax.block_until_ready(
        mlp_forward(x, w1, w2, w3, compute_dtype=jnp.float32))
    assert y_f32.shape == (B, out_dim)
    assert jnp.allclose(y_f32, y_ref, atol=5e-4, rtol=5e-4), "f32 mismatch vs reference"

    # Default operand dtype (bf16 on v6e/v7x, f32 elsewhere): looser tolerance.
    y_def = jax.block_until_ready(mlp_forward(x, w1, w2, w3))
    assert y_def.shape == (B, out_dim)
    assert jnp.allclose(y_def, y_ref, atol=2e-2, rtol=1e-1), \
        "default-dtype mismatch vs reference"

    print("KERNEL_OK")
</pallas_src>

<mosaic_0001>
module attributes {stable_mosaic.version = 11 : i64} {
  func.func @_mlp_kernel(%arg0: i32, %arg1: memref<256x512xf32, #tpu.memory_space<vmem>>, %arg2: memref<512x128xf32, #tpu.memory_space<vmem>>, %arg3: memref<128x128xf32, #tpu.memory_space<vmem>>, %arg4: memref<1x128xf32, #tpu.memory_space<vmem>>, %arg5: memref<1x256xf32, #tpu.memory_space<vmem>>) attributes {dimension_semantics = [#tpu.dimension_semantics<parallel>], iteration_bounds = array<i64: 2>, scalar_prefetch = 0 : i64, scratch_operands = 0 : i64, tpu.core_type = #tpu.core_type<tc>, window_params = [{transform_indices = @transform_0, window_bounds = array<i64: 256, 512>}, {pipeline_mode = #tpu.pipeline_mode<synchronous>, transform_indices = @transform_1, window_bounds = array<i64: 512, 128>}, {pipeline_mode = #tpu.pipeline_mode<synchronous>, transform_indices = @transform_2, window_bounds = array<i64: 128, 128>}, {pipeline_mode = #tpu.pipeline_mode<synchronous>, transform_indices = @transform_3, window_bounds = array<i64: 1, 128>}, {transform_indices = @transform_4, window_bounds = array<i64: 1, 256>}]} {
    %c0 = arith.constant 0 : index
    %c0_0 = arith.constant 0 : index
    %0 = vector.load %arg1[%c0, %c0_0] : memref<256x512xf32, #tpu.memory_space<vmem>>, vector<256x512xf32>
    %c0_1 = arith.constant 0 : index
    %c0_2 = arith.constant 0 : index
    %1 = vector.load %arg2[%c0_1, %c0_2] : memref<512x128xf32, #tpu.memory_space<vmem>>, vector<512x128xf32>
    %cst = arith.constant dense<0.000000e+00> : vector<256x128xf32>
    %2 = tpu.matmul %0, %1, %cst {dimension_numbers = #tpu.dot_dimension_numbers<[1], [0], [0], [1], [0, 0, 1, 1], [], []>} : vector<256x512xf32>, vector<512x128xf32>, vector<256x128xf32> -> vector<256x128xf32>
    %cst_3 = arith.constant 0.0441941731 : f32
    %3 = vector.broadcast %cst_3 : f32 to vector<256x128xf32>
    %4 = arith.mulf %2, %3 : vector<256x128xf32>
    %cst_4 = arith.constant 0.000000e+00 : f32
    %5 = vector.broadcast %cst_4 : f32 to vector<256x128xf32>
    %6 = arith.maximumf %4, %5 : vector<256x128xf32>
    %c0_5 = arith.constant 0 : index
    %c0_6 = arith.constant 0 : index
    %7 = vector.load %arg3[%c0_5, %c0_6] : memref<128x128xf32, #tpu.memory_space<vmem>>, vector<128x128xf32>
    %cst_7 = arith.constant dense<0.000000e+00> : vector<256x128xf32>
    %8 = tpu.matmul %6, %7, %cst_7 {dimension_numbers = #tpu.dot_dimension_numbers<[1], [0], [0], [1], [0, 0, 1, 1], [], []>} : vector<256x128xf32>, vector<128x128xf32>, vector<256x128xf32> -> vector<256x128xf32>
    %cst_8 = arith.constant 0.0883883461 : f32
    %9 = vector.broadcast %cst_8 : f32 to vector<256x128xf32>
    %10 = arith.mulf %8, %9 : vector<256x128xf32>
    %cst_9 = arith.constant 0.000000e+00 : f32
    %11 = vector.broadcast %cst_9 : f32 to vector<256x128xf32>
    %12 = arith.maximumf %10, %11 : vector<256x128xf32>
    %c0_10 = arith.constant 0 : index
    %c0_11 = arith.constant 0 : index
    %13 = vector.load %arg4[%c0_10, %c0_11] : memref<1x128xf32, #tpu.memory_space<vmem>>, vector<1x128xf32>
    %cst_12 = arith.constant dense<0.000000e+00> : vector<1x256xf32>
    %14 = tpu.matmul %13, %12, %cst_12 {dimension_numbers = #tpu.dot_dimension_numbers<[1], [1], [0], [0], [0, 0, 1, 0], [], []>} : vector<1x128xf32>, vector<256x128xf32>, vector<1x256xf32> -> vector<1x256xf32>
    %cst_13 = arith.constant 0.0883883461 : f32
    %15 = vector.broadcast %cst_13 : f32 to vector<1x256xf32>
    %16 = arith.mulf %14, %15 : vector<1x256xf32>
    %c0_14 = arith.constant 0 : index
    %c0_15 = arith.constant 0 : index
    %17 = vector.load %arg5[%c0_14, %c0_15] : memref<1x256xf32, #tpu.memory_space<vmem>>, vector<1x256xf32>
    tpu.vector_store %arg5[%c0_14, %c0_15], %16 {strides = array<i32>} : memref<1x256xf32, #tpu.memory_space<vmem>>, vector<1x256xf32>,
    return
  }
  func.func @transform_0(%arg0: i32) -> (i32, i32) {
    %c0_i32 = arith.constant 0 : i32
    %c0_i32_0 = arith.constant 0 : i32
    return %arg0, %c0_i32 : i32, i32
  }
  func.func @transform_1(%arg0: i32) -> (i32, i32) {
    %c0_i32 = arith.constant 0 : i32
    %c0_i32_0 = arith.constant 0 : i32
    %c0_i32_1 = arith.constant 0 : i32
    return %c0_i32, %c0_i32_0 : i32, i32
  }
  func.func @transform_2(%arg0: i32) -> (i32, i32) {
    %c0_i32 = arith.constant 0 : i32
    %c0_i32_0 = arith.constant 0 : i32
    %c0_i32_1 = arith.constant 0 : i32
    return %c0_i32, %c0_i32_0 : i32, i32
  }
  func.func @transform_3(%arg0: i32) -> (i32, i32) {
    %c0_i32 = arith.constant 0 : i32
    %c0_i32_0 = arith.constant 0 : i32
    %c0_i32_1 = arith.constant 0 : i32
    return %c0_i32, %c0_i32_0 : i32, i32
  }
  func.func @transform_4(%arg0: i32) -> (i32, i32) {
    %c0_i32 = arith.constant 0 : i32
    %c0_i32_0 = arith.constant 0 : i32
    return %c0_i32, %arg0 : i32, i32
  }
}

</mosaic_0001>

<bundles_post_ra>
// kernel: tpu_custom_call.1
= control target key start
LH: loop header
LB: loop body
LE: loop exit
PB: predicated region body
PF: predicated region fallthrough
CT: control target
= control target key end

     0   :  { %9 = vsyncpa [#allocation3], 0  ;;  %s2718_s0 = inlined_call_operand.hbm [shape: f32[512,512], index: 0, kind: input, shape index: {}]   ;;  %s2719_s1 = inlined_call_operand.hbm [shape: f32[512,128], index: 1, kind: input, shape index: {}]   ;;  %s2720_s2 = inlined_call_operand.hbm [shape: f32[128,128], index: 2, kind: input, shape index: {}]   ;;  %s2721_s3 = inlined_call_operand.vmem [shape: f32[1,128], index: 3, kind: input, shape index: {}]   ;;  %s2722_s4 = inlined_call_operand.hbm [shape: f32[1,512], index: 4, kind: output, shape index: {}]  }
   0x1   :  { %11 = vsyncpa [#allocation3 + $0x1], 0 }
   0x2   :  { %12 = vsyncpa [#allocation6], 0 }
   0x3   :  { %13 = vsyncpa [#allocation4], 0 }
   0x4   :  { %15 = vsyncpa [#allocation4 + $0x1], 0  ;;  %s2143_s15 = smov 0   ;;  %s2145_s16 = smov 0  }
   0x5   :  { %s2147_s17 = smov 0   ;;  %s2149_s18 = smov 0  }
   0x6 LB: > { %s2164_s19 = sadd.s32 4294967295, %s2106_s18   ;;  %s1460_s20 = sadd.s32 4294967294, %s2106_s18   ;;  %s2106_s18 = sphi %s2149_s18, %s2742_s18   ;;  %s2102_s17 = sphi %s2147_s17, %s2741_s17   ;;  %s2098_s16 = sphi %s2145_s16, %s2740_s16   ;;  %s2094_s15 = sphi %s2143_s15, %s2739_s15  }
   0x7   : > { %p41_p0 = scmp.ne.s32.totalorder %s2098_s16, %s2094_s15  ;;  %p2723_p1 = scmp.eq.s32.totalorder %s2164_s19, 0 }
   0x8   : > { %p134_p3 = scmp.eq.s32.totalorder %s1460_s20, 1  ;;  %p1461_p5 = scmp.ge.s32.totalorder %s2106_s18, 1 }
   0x9   : > { %p2173_p4 = por %p2723_p1, %p41_p0  ;;  %p141_p7 = scmp.lt.s32.totalorder %s2106_s18, 3 }
   0xa   : > { %p2178_p6 = por %p134_p3, %p41_p0  ;;  %s2108_s24 = smov [#allocation5]  }
   0xb   : > { %s2726_s21 = scalar_select %p2173_p4, 1, 0 }
   0xc   : > { %s2727_s22 = scalar_select %p2178_p6, 1, 0 }
   0xd   : > { %p2183_p8 = pnand %p1461_p5, %p141_p7  ;;  %s153_s25 = sshll.u32 %s2108_s24, 4  ;;  %s2187_s25 = int_to_ptr.vmem [resolvable:$true] %s153_s25 }
   0xe   : > { %s2109_s27 = smov [#allocation7]   ;;  %s1950_s5 = scalar_lea.hbm %s2719_s1, 8192 }
   0xf   : > { %p1889_p9 = pneg %p2183_p8  ;;  %s166_s28 = sshll.u32 %s2109_s27, 4  ;;  %s2198_s28 = int_to_ptr.vmem [resolvable:$true] %s166_s28 }
  0x10   : > { %p1951_p12 = scmp.ne.s32.totalorder %s2719_s1, %s1950_s5  ;;  %p1957_p5 = scmp.lt.u32.totalorder %s1950_s5, %s2719_s1 }
  0x11   : > { %p2194_p11 = pnand %p1889_p9, %p2723_p1 }
  0x13   : > { %p1952_p13 = pneg %p2194_p11 }
  0x15   : > { %p1953_p0 = pnand %p1952_p13, %p1951_p12 }
  0x17   : > { %p1954_p3 = pneg %p1953_p0 }
  0x19   : > { %p1959_p7 = pnand %p1957_p5, %p1954_p3 }
  0x1b   : > { %1962 = shalt.err (!%p1959_p7)
}
  0x1c   : > { %s1963_s10 = scalar_lea.vmem %s2187_s25, 8192  ;;  %p1971_p2 = scmp.lt.s32.totalorder %s2187_s25, %s2187_s25 }
  0x1d   : > { %p1964_p9 = scmp.ne.s32.totalorder %s2187_s25, %s1963_s10  ;;  %p1972_p12 = scmp.lt.s32.totalorder %s1963_s10, %s1963_s10 }
  0x1f   : > { %p1966_p10 = pnand %p1964_p9, %p1952_p13  ;;  %p1973_p0 = por %p1972_p12, %p1971_p2 }
  0x21   : > { %p1967_p1 = pneg %p1966_p10 }
  0x23   : > { %p1974_p6 = pnand %p1973_p0, %p1967_p1 }
  0x25   : > { %1977 = shalt.err (!%p1974_p6)
}
  0x26   : > { %s2110_s11 = smov 128   ;;  %s2111_s12 = smov 8  }
  0x27   : > { %1892 = dma.hbm_to_vmem [thread:$0]  (!%p2194_p11), %s2719_s1, 8192, %s2187_s25, [#allocation6], %s2110_s11, %s2110_s11, %s2111_s12  }
  0x28   : > { %s1978_s27 = scalar_lea.hbm %s2720_s2, 2048 }
  0x29   : > { %p1979_p2 = scmp.ne.s32.totalorder %s2720_s2, %s1978_s27  ;;  %p1985_p10 = scmp.lt.u32.totalorder %s1978_s27, %s2720_s2 }
  0x2b   : > { %p1981_p1 = pnand %p1979_p2, %p1952_p13 }
  0x2d   : > { %p1982_p6 = pneg %p1981_p1 }
  0x2f   : > { %p1987_p3 = pnand %p1985_p10, %p1982_p6 }
  0x31   : > { %1990 = shalt.err (!%p1987_p3)
}
  0x32   : > { %s1991_s25 = scalar_lea.vmem %s2198_s28, 2048  ;;  %p1999_p12 = scmp.lt.s32.totalorder %s2198_s28, %s2198_s28 }
  0x33   : > { %p1992_p5 = scmp.ne.s32.totalorder %s2198_s28, %s1991_s25  ;;  %p2000_p0 = scmp.lt.s32.totalorder %s1991_s25, %s1991_s25 }
  0x35   : > { %p1994_p7 = pnand %p1992_p5, %p1952_p13  ;;  %p2001_p2 = por %p2000_p0, %p1999_p12 }
  0x37   : > { %p1995_p9 = pneg %p1994_p7 }
  0x39   : > { %p2002_p1 = pnand %p2001_p2, %p1995_p9 }
  0x3b   : > { %2005 = shalt.err (!%p2002_p1)
}
  0x3c   : > { %1895 = dma.hbm_to_vmem [thread:$0]  (!%p2194_p11), %s2720_s2, 2048, %s2198_s28, [#allocation6], %s2110_s11, %s2110_s11, %s2111_s12  }
  0x3d   : > { %s2253_s9 = sadd.s32 1, %s2106_s18   ;;  %s28_s26 = sadd.s32 1, %s2102_s17 }
  0x3e   : > { %s25_s10 = ssub.s32 %s2106_s18, %s2253_s9  ;;  %p35_p13 = scmp.ne.s32.totalorder %s2102_s17, %s2098_s16 }
  0x3f   : > { %p26_p6 = scmp.eq.s32.totalorder %s25_s10, 0  ;;  %p36_p10 = scmp.eq.s32.totalorder %s2106_s18, 0 }
  0x40   : > { %p2730_p3 = scmp.eq.s32.totalorder %s2164_s19, 1  ;;  %p1906_p7 = scmp.lt.s32.totalorder %s2106_s18, 2 }
  0x41   : > { %s2269_s14 = scalar_select %p26_p6, %s2102_s17, %s28_s26  }
  0x42   : > { %p2263_p5 = por %p2730_p3, %p35_p13  ;;  %p37_p9 = por %p36_p10, %p35_p13 }
  0x43   : > { %s183_s20 = sand.u32 1, %s2102_s17   ;;  %s1480_s28 = sshll.u32 %s2106_s18, 14 }
  0x44   : > { %s2731_s13 = scalar_select %p2263_p5, 1, 0 }
  0x45   : > { %s1465_s24 = sshll.u32 %s183_s20, 10  ;;  %s2276_s27 = scalar_lea.hbm %s2718_s0, %s1480_s28 }
  0x46   : > { %s187_s29 = scalar_lea.vmem [#allocation2], %s1465_s24  ;;  %p2280_p11 = pnand %p1906_p7, %p37_p9 }
  0x47   : > { %s195_s30 = sshll.u32 %s187_s29, 4  ;;  %s2284_s6 = scalar_lea.sflag [#allocation3], %s183_s20  ;;  %s2278_s30 = int_to_ptr.vmem [resolvable:$true] %s195_s30 }
  0x48   : > { %s2006_s25 = scalar_lea.hbm %s2276_s27, 16384  ;;  %p2008_p0 = pneg %p2280_p11 }
  0x49   : > { %p2007_p12 = scmp.ne.s32.totalorder %s2276_s27, %s2006_s25  ;;  %s2011_s26 = scalar_lea.hbm %s2718_s0, 32768 }
  0x4a   : > { %p2012_p13 = scmp.lt.u32.totalorder %s2276_s27, %s2718_s0  ;;  %p2013_p6 = scmp.lt.u32.totalorder %s2011_s26, %s2006_s25 }
  0x4b   : > { %p2009_p2 = pnand %p2008_p0, %p2007_p12  ;;  %p2015_p3 = scmp.lt.u32.totalorder %s2006_s25, %s2276_s27 }
  0x4c   : > { %p2014_p10 = por %p2013_p6, %p2012_p13 }
  0x4d   : > { %p2010_p1 = pneg %p2009_p2 }
  0x4e   : > { %p2016_p7 = por %p2015_p3, %p2014_p10 }
  0x50   : > { %p2017_p9 = pnand %p2016_p7, %p2010_p1 }
  0x52   : > { %2020 = shalt.err (!%p2017_p9)
}
  0x53   : > { %s2021_s20 = scalar_lea.vmem %s2278_s30, 16384  ;;  %s2112_s28 = smov [#allocation2]  }
  0x54   : > { %p2022_p12 = scmp.ne.s32.totalorder %s2278_s30, %s2021_s20  ;;  %s2026_s11 = sshll.u32 %s2112_s28, 4  ;;  %s2027_s11 = int_to_ptr.vmem [resolvable:$false] %s2026_s11 }
  0x55   : > { %s2028_s12 = scalar_lea.vmem %s2027_s11, 32768  ;;  %p2029_p4 = scmp.lt.s32.totalorder %s2278_s30, %s2027_s11 }
  0x56   : > { %p2024_p2 = pnand %p2022_p12, %p2008_p0  ;;  %p2030_p13 = scmp.lt.s32.totalorder %s2028_s12, %s2021_s20 }
  0x58   : > { %p2025_p5 = pneg %p2024_p2  ;;  %p2031_p6 = por %p2030_p13, %p2029_p4 }
  0x5a   : > { %p2032_p10 = pnand %p2031_p6, %p2025_p5 }
  0x5c   : > { %2035 = shalt.err (!%p2032_p10)
}
  0x5d   : > { %s2113_s29 = smov 512   ;;  %s2114_s25 = smov 32  }
  0x5e   : > { %1899 = dma.hbm_to_vmem [thread:$0]  (!%p2280_p11), %s2276_s27, 16384, %s2278_s30, %s2284_s6, %s2113_s29, %s2113_s29, %s2114_s25  }
  0x5f   : > { %207 = sbr.rel (%p2183_p8) target bundleno = 1083 (0x43b), region = 36  ;;  %s2315_s7 = sand.u32 (!%p2183_p8), 1, %s2098_s16  }
  0x60   : > { %s1470_s8 = sshll.u32 (!%p2183_p8), %s2315_s7, 10  ;;  %s210_s26 = scalar_lea.sflag (!%p2183_p8), [#allocation3], %s2315_s7 }
  0x61   : > { %s2319_s10 = scalar_lea.vmem (!%p2183_p8), [#allocation2], %s1470_s8  ;;  %p2733_p4 = scmp.ne.s32.totalorder (!%p2183_p8), %s2726_s21, 0 }
  0x66   : > { %2081 = dma.done.wait (%p2733_p4), %s210_s26, 16384  }
  0x67   : > { %2083 = vsyncadd (%p2733_p4), %s210_s26, 4294950912  ;;  %p2734_p5 = scmp.eq.s32.totalorder %s2164_s19, 0 }
  0x69   : > { %2085 = dma.done.wait (%p2734_p5), [#allocation6], 10240   ;;  %p2735_p8 = pmov %p2734_p5 }
  0x6a   : > { %v2115_v0 = vmov 0.0|0.0   ;;  %v376_v1 = vld [vmem:[#allocation5] sm:$0xff]  ;;  %v377_v2 = vld [vmem:[#allocation5 + $0x8] sm:$0xff]  ;;  %v378_v3 = vld [vmem:[#allocation5 + $0x10] sm:$0xff]  ;;  %s1473_s27 = sshll.u32 %s2315_s7, 1  ;;  %s1481_s30 = sshll.u32 %s2164_s19, 5 }
  0x6b   : > { %2087 = vsyncadd (%p2735_p8), [#allocation6], 4294957056  ;;  %1644 = vmatprep.subr.bf16.mxu0 %v2115_v0  ;;  %1804 = vmatprep.subr.bf16.mxu1 %v2115_v0  ;;  %v1645_v4 = vpack.c.bf16 %v377_v2, %v376_v1  ;;  %v379_v5 = vld [vmem:[#allocation5 + $0x18] sm:$0xff]  ;;  %v380_v7 = vld [vmem:[#allocation5 + $0x20] sm:$0xff]  ;;  %s245_s5 = scalar_lea.vmem [#allocation8], %s1473_s27  ;;  %s2674_s28 = scalar_lea.hbm %s2722_s4, %s1481_s30 }
  0x6c   : > { %v1648_v6 = vpack.c.bf16 %v379_v5, %v378_v3  ;;  %v381_v8 = vld [vmem:[#allocation5 + $0x28] sm:$0xff]  ;;  %v408_v9 = vld [vmem:[#allocation5 + $0x100] sm:$0xff]  ;;  %v382_v11 = vld [vmem:[#allocation5 + $0x30] sm:$0xff]  ;;  %s1371_s6 = sshll.u32 %s245_s5, 4  ;;  %s1357_s11 = scalar_lea.sflag [#allocation4], %s2315_s7  ;;  %s2676_s6 = int_to_ptr.vmem [resolvable:$true] %s1371_s6 }
  0x6d   : > { %1646 = vmatpush1.bf16.msra.mxu0 %v1645_v4  ;;  %v1651_v10 = vpack.c.bf16 %v381_v8, %v380_v7  ;;  %v409_v12 = vld [vmem:[#allocation5 + $0x108] sm:$0xff]  ;;  %v383_v13 = vld [vmem:[#allocation5 + $0x38] sm:$0xff]  ;;  %v410_v15 = vld [vmem:[#allocation5 + $0x110] sm:$0xff]  ;;  %s2036_s12 = scalar_lea.vmem %s2676_s6, 32  ;;  %p2736_p0 = scmp.ne.s32.totalorder %s2731_s13, 0 }
  0x6e   : > { %1647 = vmatprep.subr.bf16.mxu0 %v2115_v0  ;;  %v2333_v14 = vpack.c.bf16 %v409_v12, %v408_v9  ;;  %v411_v16 = vld [vmem:[#allocation5 + $0x118] sm:$0xff]  ;;  %v1654_v18 = vpack.c.bf16 %v383_v13, %v382_v11  ;;  %v412_v19 = vld [vmem:[#allocation5 + $0x120] sm:$0xff]  ;;  %v413_v20 = vld [vmem:[#allocation5 + $0x128] sm:$0xff]  ;;  %p2037_p11 = scmp.ne.s32.totalorder %s2676_s6, %s2036_s12  ;;  %s2117_s19 = smov [#allocation8]  }
  0x6f   : > { %v2336_v17 = vpack.c.bf16 %v411_v16, %v410_v15  ;;  %v384_v21 = vld [vmem:[#allocation5 + $0x40] sm:$0xff]  ;;  %v385_v22 = vld [vmem:[#allocation5 + $0x48] sm:$0xff]  ;;  %v2341_v23 = vpack.c.bf16 %v413_v20, %v412_v19  ;;  %v414_v25 = vld [vmem:[#allocation5 + $0x130] sm:$0xff]  ;;  %s2040_s29 = sshll.u32 %s2117_s19, 4  ;;  %s2041_s29 = int_to_ptr.vmem [resolvable:$false] %s2040_s29 }
  0x70   : > { %1820 = vmatpush1.bf16.msra.mxu1 %v2333_v14  ;;  %v1657_v24 = vpack.c.bf16 %v385_v22, %v384_v21  ;;  %v415_v26 = vld [vmem:[#allocation5 + $0x138] sm:$0xff]  ;;  %v249_v27 = vld [vmem:[%s2319_s10 + $0x8] sm:$0xff]  ;;  %v386_v28 = vld [vmem:[#allocation5 + $0x50] sm:$0xff]  ;;  %p2038_p1 = pnand %p2037_p11, %p2736_p0  ;;  %s2042_s25 = scalar_lea.vmem %s2041_s29, 64 }
  0x71   : > { %1649 = vmatpush1.bf16.msra.mxu0 %v1648_v6  ;;  %1805 = vmatprep.subr.bf16.mxu1 %v2115_v0  ;;  %v387_v29 = vld [vmem:[#allocation5 + $0x58] sm:$0xff]  ;;  %v2347_v30 = vpack.c.bf16 %v415_v26, %v414_v25  ;;  %v416_v32 = vld [vmem:[#allocation5 + $0x140] sm:$0xff]  ;;  %v417_v33 = vld [vmem:[#allocation5 + $0x148] sm:$0xff]  ;;  %p2043_p7 = scmp.lt.s32.totalorder %s2676_s6, %s2041_s29  ;;  %p2044_p9 = scmp.lt.s32.totalorder %s2042_s25, %s2036_s12 }
  0x72   : > { %1650 = vmatprep.subr.bf16.mxu0 %v2115_v0  ;;  %504 = vmatprep.mubr.f32.mxu0 %v249_v27  ;;  %v1660_v31 = vpack.c.bf16 %v387_v29, %v386_v28  ;;  %v388_v34 = vld [vmem:[#allocation5 + $0x60] sm:$0xff]  ;;  %v389_v35 = vld [vmem:[#allocation5 + $0x68] sm:$0xff]  ;;  %v2352_v36 = vpack.c.bf16 %v417_v33, %v416_v32  ;;  %v418_v38 = vld [vmem:[#allocation5 + $0x150] sm:$0xff]  ;;  %p2039_p3 = pneg %p2038_p1 }
  0x73   : > { %v1663_v37 = vpack.c.bf16 %v389_v35, %v388_v34  ;;  %v419_v39 = vld [vmem:[#allocation5 + $0x158] sm:$0xff]  ;;  %v390_v40 = vld [vmem:[#allocation5 + $0x70] sm:$0xff]  ;;  %v420_v44 = vld [vmem:[#allocation5 + $0x160] sm:$0xff]  ;;  %p2045_p12 = por %p2044_p9, %p2043_p7 }
  0x74   : > { %1821 = vmatpush1.bf16.msra.mxu1 %v2336_v17  ;;  %v391_v41 = vld [vmem:[#allocation5 + $0x78] sm:$0xff]  ;;  %v2357_v42 = vpack.c.bf16 %v419_v39, %v418_v38  ;;  %v421_v45 = vld [vmem:[#allocation5 + $0x168] sm:$0xff]  ;;  %v392_v47 = vld [vmem:[#allocation5 + $0x80] sm:$0xff] }
  0x75   : > { %1652 = vmatpush1.bf16.msra.mxu0 %v1651_v10  ;;  %1806 = vmatprep.subr.bf16.mxu1 %v2115_v0  ;;  %v1666_v43 = vpack.c.bf16 %v391_v41, %v390_v40  ;;  %v287_v46 = vld [vmem:[%s2319_s10 + $0x138] sm:$0xff]  ;;  %v393_v48 = vld [vmem:[#allocation5 + $0x88] sm:$0xff]  ;;  %v2363_v49 = vpack.c.bf16 %v421_v45, %v420_v44  ;;  %v422_v51 = vld [vmem:[#allocation5 + $0x170] sm:$0xff]  ;;  %p2046_p2 = pnand %p2045_p12, %p2039_p3 }
  0x76   : > { %1653 = vmatprep.subr.bf16.mxu0 %v2115_v0  ;;  %774 = vmatprep.mubr.f32.mxu1 %v287_v46  ;;  %v1669_v50 = vpack.c.bf16 %v393_v48, %v392_v47  ;;  %v423_v52 = vld [vmem:[#allocation5 + $0x178] sm:$0xff]  ;;  %v394_v53 = vld [vmem:[#allocation5 + $0x90] sm:$0xff]  ;;  %v424_v57 = vld [vmem:[#allocation5 + $0x180] sm:$0xff] }
  0x77   : > { %v395_v54 = vld [vmem:[#allocation5 + $0x98] sm:$0xff]  ;;  %v2368_v55 = vpack.c.bf16 %v423_v52, %v422_v51  ;;  %v425_v58 = vld [vmem:[#allocation5 + $0x188] sm:$0xff]  ;;  %v396_v59 = vld [vmem:[#allocation5 + $0xa0] sm:$0xff] }
  0x78   : > { %1822 = vmatpush1.bf16.msra.mxu1 %v2341_v23  ;;  %v1672_v56 = vpack.c.bf16 %v395_v54, %v394_v53  ;;  %v397_v60 = vld [vmem:[#allocation5 + $0xa8] sm:$0xff]  ;;  %v2373_v61 = vpack.c.bf16 %v425_v58, %v424_v57  ;;  %v426_v63 = vld [vmem:[#allocation5 + $0x190] sm:$0xff]  ;;  %v427_v1 = vld [vmem:[#allocation5 + $0x198] sm:$0xff] }
  0x79   : > { %1655 = vmatpush1.bf16.msra.mxu0 %v1654_v18  ;;  %1807 = vmatprep.subr.bf16.mxu1 %v2115_v0  ;;  %v1675_v62 = vpack.c.bf16 %v397_v60, %v396_v59  ;;  %v398_v2 = vld [vmem:[#allocation5 + $0xb0] sm:$0xff]  ;;  %v399_v3 = vld [vmem:[#allocation5 + $0xb8] sm:$0xff]  ;;  %v2378_v4 = vpack.c.bf16 %v427_v1, %v426_v63  ;;  %v428_v6 = vld [vmem:[#allocation5 + $0x1a0] sm:$0xff] }
  0x7a   : > { %1656 = vmatprep.subr.bf16.mxu0 %v2115_v0  ;;  %v1678_v5 = vpack.c.bf16 %v399_v3, %v398_v2  ;;  %v429_v7 = vld [vmem:[#allocation5 + $0x1a8] sm:$0xff]  ;;  %v400_v8 = vld [vmem:[#allocation5 + $0xc0] sm:$0xff]  ;;  %v430_v12 = vld [vmem:[#allocation5 + $0x1b0] sm:$0xff] }
  0x7b   : > { %v401_v9 = vld [vmem:[#allocation5 + $0xc8] sm:$0xff]  ;;  %v2383_v10 = vpack.c.bf16 %v429_v7, %v428_v6  ;;  %v431_v13 = vld [vmem:[#allocation5 + $0x1b8] sm:$0xff]  ;;  %v402_v15 = vld [vmem:[#allocation5 + $0xd0] sm:$0xff] }
  0x7c   : > { %1823 = vmatpush1.bf16.msra.mxu1 %v2347_v30  ;;  %v1681_v11 = vpack.c.bf16 %v401_v9, %v400_v8  ;;  %v403_v16 = vld [vmem:[#allocation5 + $0xd8] sm:$0xff]  ;;  %v2388_v18 = vpack.c.bf16 %v431_v13, %v430_v12  ;;  %v432_v20 = vld [vmem:[#allocation5 + $0x1c0] sm:$0xff]  ;;  %v433_v21 = vld [vmem:[#allocation5 + $0x1c8] sm:$0xff] }
  0x7d   : > { %1658 = vmatpush1.bf16.msra.mxu0 %v1657_v24  ;;  %1808 = vmatprep.subr.bf16.mxu1 %v2115_v0  ;;  %v1684_v19 = vpack.c.bf16 %v403_v16, %v402_v15  ;;  %v404_v22 = vld [vmem:[#allocation5 + $0xe0] sm:$0xff]  ;;  %v405_v24 = vld [vmem:[#allocation5 + $0xe8] sm:$0xff]  ;;  %v2393_v25 = vpack.c.bf16 %v433_v21, %v432_v20  ;;  %v434_v27 = vld [vmem:[#allocation5 + $0x1d0] sm:$0xff] }
  0x7e   : > { %1659 = vmatprep.subr.bf16.mxu0 %v2115_v0  ;;  %v1687_v26 = vpack.c.bf16 %v405_v24, %v404_v22  ;;  %v435_v28 = vld [vmem:[#allocation5 + $0x1d8] sm:$0xff]  ;;  %v406_v29 = vld [vmem:[#allocation5 + $0xf0] sm:$0xff]  ;;  %v436_v34 = vld [vmem:[#allocation5 + $0x1e0] sm:$0xff] }
  0x7f   : > { %v2398_v32 = vpack.c.bf16 %v435_v28, %v434_v27  ;;  %v437_v35 = vld [vmem:[#allocation5 + $0x1e8] sm:$0xff]  ;;  %v248_v38 = vld [vmem:[%s2319_s10] sm:$0xff]  ;;  %v438_v39 = vld [vmem:[#allocation5 + $0x1f0] sm:$0xff] }
  0x80   : > { %1824 = vmatpush1.bf16.msra.mxu1 %v2352_v36  ;;  %v439_v40 = vld [vmem:[#allocation5 + $0x1f8] sm:$0xff]  ;;  %v253_v41 = vld [vmem:[%s2319_s10 + $0x28] sm:$0xff]  ;;  %v252_v44 = vld [vmem:[%s2319_s10 + $0x20] sm:$0xff] }
  0x81   : > { %1661 = vmatpush1.bf16.msra.mxu0 %v1660_v31  ;;  %1809 = vmatprep.subr.bf16.mxu1 %v2115_v0  ;;  %v407_v31 = vld [vmem:[#allocation5 + $0xf8] sm:$0xff]  ;;  %v257_v45 = vld [vmem:[%s2319_s10 + $0x48] sm:$0xff]  ;;  %v286_v46 = vld [vmem:[%s2319_s10 + $0x130] sm:$0xff] }
  0x82   : > { %1662 = vmatprep.subr.bf16.mxu0 %v2115_v0  ;;  %v1690_v33 = vpack.c.bf16 %v407_v31, %v406_v29  ;;  %v256_v47 = vld [vmem:[%s2319_s10 + $0x40] sm:$0xff]  ;;  %v261_v48 = vld [vmem:[%s2319_s10 + $0x68] sm:$0xff]  ;;  %v295_v52 = vld [vmem:[%s2319_s10 + $0x178] sm:$0xff] }
  0x83   : > { %v260_v51 = vld [vmem:[%s2319_s10 + $0x60] sm:$0xff]  ;;  %v265_v53 = vld [vmem:[%s2319_s10 + $0x88] sm:$0xff]  ;;  %v303_v59 = vld [vmem:[%s2319_s10 + $0x1b8] sm:$0xff] }
  0x84   : > { %1825 = vmatpush1.bf16.msra.mxu1 %v2357_v42  ;;  %v264_v54 = vld [vmem:[%s2319_s10 + $0x80] sm:$0xff]  ;;  %v269_v57 = vld [vmem:[%s2319_s10 + $0xa8] sm:$0xff]  ;;  %v307_v63 = vld [vmem:[%s2319_s10 + $0x1d8] sm:$0xff] }
  0x85   : > { %1664 = vmatpush1.bf16.msra.mxu0 %v1663_v37  ;;  %1810 = vmatprep.subr.bf16.mxu1 %v2115_v0  ;;  %v2403_v37 = vpack.c.bf16 %v437_v35, %v436_v34  ;;  %v268_v58 = vld [vmem:[%s2319_s10 + $0xa0] sm:$0xff]  ;;  %v273_v60 = vld [vmem:[%s2319_s10 + $0xc8] sm:$0xff]  ;;  %v311_v3 = vld [vmem:[%s2319_s10 + $0x1f8] sm:$0xff] }
  0x86   : > { %1665 = vmatprep.subr.bf16.mxu0 %v2115_v0  ;;  %v277_v1 = vld [vmem:[%s2319_s10 + $0xe8] sm:$0xff]  ;;  %v276_v2 = vld [vmem:[%s2319_s10 + $0xe0] sm:$0xff]  ;;  %v315_v7 = vld [vmem:[%s2319_s10 + $0x218] sm:$0xff] }
  0x87   : > { %v280_v6 = vld [vmem:[%s2319_s10 + $0x100] sm:$0xff]  ;;  %v285_v8 = vld [vmem:[%s2319_s10 + $0x128] sm:$0xff]  ;;  %v323_v15 = vld [vmem:[%s2319_s10 + $0x258] sm:$0xff] }
  0x88   : > { %1826 = vmatpush1.bf16.msra.mxu1 %v2363_v49  ;;  %v284_v9 = vld [vmem:[%s2319_s10 + $0x120] sm:$0xff]  ;;  %v289_v12 = vld [vmem:[%s2319_s10 + $0x148] sm:$0xff]  ;;  %v327_v20 = vld [vmem:[%s2319_s10 + $0x278] sm:$0xff] }
  0x89   : > { %1667 = vmatpush1.bf16.msra.mxu0 %v1666_v43  ;;  %1811 = vmatprep.subr.bf16.mxu1 %v2115_v0  ;;  %v2410_v43 = vpack.c.bf16 %v439_v40, %v438_v39  ;;  %v288_v13 = vld [vmem:[%s2319_s10 + $0x140] sm:$0xff]  ;;  %v293_v16 = vld [vmem:[%s2319_s10 + $0x168] sm:$0xff]  ;;  %v331_v24 = vld [vmem:[%s2319_s10 + $0x298] sm:$0xff] }
  0x8a   : > { %1668 = vmatprep.subr.bf16.mxu0 %v2115_v0  ;;  %v297_v21 = vld [vmem:[%s2319_s10 + $0x188] sm:$0xff]  ;;  %v296_v22 = vld [vmem:[%s2319_s10 + $0x180] sm:$0xff]  ;;  %v335_v28 = vld [vmem:[%s2319_s10 + $0x2b8] sm:$0xff] }
  0x8b   : > { %v300_v27 = vld [vmem:[%s2319_s10 + $0x1a0] sm:$0xff]  ;;  %v305_v29 = vld [vmem:[%s2319_s10 + $0x1c8] sm:$0xff] }
  0x8c   : > { %1827 = vmatpush1.bf16.msra.mxu1 %v2368_v55  ;;  %v304_v31 = vld [vmem:[%s2319_s10 + $0x1c0] sm:$0xff]  ;;  %v309_v34 = vld [vmem:[%s2319_s10 + $0x1e8] sm:$0xff] }
  0x8d   : > { %1670 = vmatpush1.bf16.msra.mxu0 %v1669_v50  ;;  %1812 = vmatprep.subr.bf16.mxu1 %v2115_v0  ;;  %v290_v50 = vld [vmem:[%s2319_s10 + $0x150] sm:$0xff]  ;;  %v308_v35 = vld [vmem:[%s2319_s10 + $0x1e0] sm:$0xff]  ;;  %v313_v39 = vld [vmem:[%s2319_s10 + $0x208] sm:$0xff] }
  0x8e   : > { %1671 = vmatprep.subr.bf16.mxu0 %v2115_v0  ;;  %v312_v40 = vld [vmem:[%s2319_s10 + $0x200] sm:$0xff] }
  0x90   : > { %1828 = vmatpush1.bf16.msra.mxu1 %v2373_v61 }
  0x91   : > { %1673 = vmatpush1.bf16.msra.mxu0 %v1672_v56  ;;  %1813 = vmatprep.subr.bf16.mxu1 %v2115_v0  ;;  %v299_v56 = vld [vmem:[%s2319_s10 + $0x198] sm:$0xff] }
  0x92   : > { %1674 = vmatprep.subr.bf16.mxu0 %v2115_v0 }
  0x94   : > { %1829 = vmatpush1.bf16.msra.mxu1 %v2378_v4 }
  0x95   : > { %1676 = vmatpush1.bf16.msra.mxu0 %v1675_v62  ;;  %1814 = vmatprep.subr.bf16.mxu1 %v2115_v0  ;;  %v272_v62 = vld [vmem:[%s2319_s10 + $0xc0] sm:$0xff] }
  0x96   : > { %1677 = vmatprep.subr.bf16.mxu0 %v2115_v0 }
  0x98   : > { %1830 = vmatpush1.bf16.msra.mxu1 %v2383_v10 }
  0x99   : > { %1679 = vmatpush1.bf16.msra.mxu0 %v1678_v5  ;;  %1815 = vmatprep.subr.bf16.mxu1 %v2115_v0  ;;  %v281_v5 = vld [vmem:[%s2319_s10 + $0x108] sm:$0xff] }
  0x9a   : > { %1680 = vmatprep.subr.bf16.mxu0 %v2115_v0 }
  0x9c   : > { %1831 = vmatpush1.bf16.msra.mxu1 %v2388_v18 }
  0x9d   : > { %1682 = vmatpush1.bf16.msra.mxu0 %v1681_v11  ;;  %1816 = vmatprep.subr.bf16.mxu1 %v2115_v0  ;;  %v319_v11 = vld [vmem:[%s2319_s10 + $0x238] sm:$0xff] }
  0x9e   : > { %1683 = vmatprep.subr.bf16.mxu0 %v2115_v0 }
  0xa0   : > { %1832 = vmatpush1.bf16.msra.mxu1 %v2393_v25 }
  0xa1   : > { %1685 = vmatpush1.bf16.msra.mxu0 %v1684_v19  ;;  %1817 = vmatprep.subr.bf16.mxu1 %v2115_v0  ;;  %v292_v19 = vld [vmem:[%s2319_s10 + $0x160] sm:$0xff] }
  0xa2   : > { %1686 = vmatprep.subr.bf16.mxu0 %v2115_v0 }
  0xa4   : > { %1833 = vmatpush1.bf16.msra.mxu1 %v2398_v32 }
  0xa5   : > { %1688 = vmatpush1.bf16.msra.mxu0 %v1687_v26  ;;  %1818 = vmatprep.subr.bf16.mxu1 %v2115_v0  ;;  %v301_v26 = vld [vmem:[%s2319_s10 + $0x1a8] sm:$0xff] }
  0xa6   : > { %1689 = vmatprep.subr.bf16.mxu0 %v2115_v0 }
  0xa8   : > { %1834 = vmatpush1.bf16.msra.mxu1 %v2403_v37 }
  0xa9   : > { %1691 = vmatpush1.bf16.msra.mxu0 %v1690_v33  ;;  %1819 = vmatprep.subr.bf16.mxu1 %v2115_v0  ;;  %v339_v33 = vld [vmem:[%s2319_s10 + $0x2d8] sm:$0xff] }
  0xaa   : > { %1692 = vmatprep.subr.bf16.mxu0 %v2115_v0 }
  0xac   : > { %505 = vmatmul.mubr.f32.vlgmr.msra.gmra.mrb[0].mxu0 %v248_v38  ;;  %1835 = vmatpush1.bf16.msra.mxu1 %v2410_v43  ;;  %v343_v38 = vld [vmem:[%s2319_s10 + $0x2f8] sm:$0xff] }
  0xad   : > { %1694 = vmatpush1.bf16.msra.mxu0 %v2333_v14  ;;  %509 = vmatprep.mubr.f32.mxu0 %v253_v41  ;;  %v291_v14 = vld [vmem:[%s2319_s10 + $0x158] sm:$0xff] }
  0xae   : > { %1695 = vmatprep.subr.bf16.mxu0 %v2115_v0  ;;  %v347_v41 = vld [vmem:[%s2319_s10 + $0x318] sm:$0xff] }
  0xaf   : > { %775 = vmatmul.mubr.f32.vlgmr.msra.gmra.mrb[0].mxu1 %v286_v46  ;;  %v321_v46 = vld [vmem:[%s2319_s10 + $0x248] sm:$0xff] }
  0xb0   : > { %510 = vmatmul.mubr.f32.gmra.mrb[2].mxu0 %v252_v44  ;;  %779 = vmatprep.mubr.f32.mxu1 %v291_v14  ;;  %v317_v44 = vld [vmem:[%s2319_s10 + $0x228] sm:$0xff]  ;;  %v355_v14 = vld [vmem:[%s2319_s10 + $0x358] sm:$0xff] }
  0xb1   : > { %514 = vmatprep.mubr.f32.mxu0 %v257_v45  ;;  %1697 = vmatpush1.bf16.msra.mxu0 %v2336_v17  ;;  %v294_v17 = vld [vmem:[%s2319_s10 + $0x170] sm:$0xff]  ;;  %v351_v45 = vld [vmem:[%s2319_s10 + $0x338] sm:$0xff] }
  0xb2   : > { %1698 = vmatprep.subr.bf16.mxu0 %v2115_v0 }
  0xb3   : > { %780 = vmatmul.mubr.f32.gmra.mrb[2].mxu1 %v290_v50  ;;  %v354_v50 = vld [vmem:[%s2319_s10 + $0x350] sm:$0xff] }
  0xb4   : > { %515 = vmatmul.mubr.f32.gmra.mrb[4].mxu0 %v256_v47  ;;  %784 = vmatprep.mubr.f32.mxu1 %v295_v52  ;;  %v350_v47 = vld [vmem:[%s2319_s10 + $0x330] sm:$0xff]  ;;  %v359_v52 = vld [vmem:[%s2319_s10 + $0x378] sm:$0xff] }
  0xb5   : > { %519 = vmatprep.mubr.f32.mxu0 %v261_v48  ;;  %1700 = vmatpush1.bf16.msra.mxu0 %v2341_v23  ;;  %v298_v23 = vld [vmem:[%s2319_s10 + $0x190] sm:$0xff]  ;;  %v325_v48 = vld [vmem:[%s2319_s10 + $0x268] sm:$0xff] }
  0xb6   : > { %1701 = vmatprep.subr.bf16.mxu0 %v2115_v0 }
  0xb7   : > { %785 = vmatmul.mubr.f32.gmra.mrb[4].mxu1 %v294_v17  ;;  %v358_v17 = vld [vmem:[%s2319_s10 + $0x370] sm:$0xff] }
  0xb8   : > { %520 = vmatmul.mubr.f32.gmra.mrb[6].mxu0 %v260_v51  ;;  %789 = vmatprep.mubr.f32.mxu1 %v299_v56  ;;  %v324_v51 = vld [vmem:[%s2319_s10 + $0x260] sm:$0xff]  ;;  %v363_v56 = vld [vmem:[%s2319_s10 + $0x398] sm:$0xff] }
  0xb9   : > { %524 = vmatprep.mubr.f32.mxu0 %v265_v53  ;;  %1703 = vmatpush1.bf16.msra.mxu0 %v2347_v30  ;;  %v302_v30 = vld [vmem:[%s2319_s10 + $0x1b0] sm:$0xff]  ;;  %v329_v53 = vld [vmem:[%s2319_s10 + $0x288] sm:$0xff] }
  0xba   : > { %1704 = vmatprep.subr.bf16.mxu0 %v2115_v0 }
  0xbb   : > { %790 = vmatmul.mubr.f32.gmra.mrb[6].mxu1 %v298_v23  ;;  %v362_v23 = vld [vmem:[%s2319_s10 + $0x390] sm:$0xff] }
  0xbc   : > { %525 = vmatmul.mubr.f32.gmra.mrb[8].mxu0 %v264_v54  ;;  %794 = vmatprep.mubr.f32.mxu1 %v303_v59  ;;  %v328_v54 = vld [vmem:[%s2319_s10 + $0x280] sm:$0xff]  ;;  %v367_v59 = vld [vmem:[%s2319_s10 + $0x3b8] sm:$0xff] }
  0xbd   : > { %529 = vmatprep.mubr.f32.mxu0 %v269_v57  ;;  %1706 = vmatpush1.bf16.msra.mxu0 %v2352_v36  ;;  %v306_v36 = vld [vmem:[%s2319_s10 + $0x1d0] sm:$0xff]  ;;  %v333_v57 = vld [vmem:[%s2319_s10 + $0x2a8] sm:$0xff] }
  0xbe   : > { %1707 = vmatprep.subr.bf16.mxu0 %v2115_v0 }
  0xbf   : > { %795 = vmatmul.mubr.f32.gmra.mrb[8].mxu1 %v302_v30  ;;  %v366_v30 = vld [vmem:[%s2319_s10 + $0x3b0] sm:$0xff] }
  0xc0   : > { %530 = vmatmul.mubr.f32.gmra.mrb[10].mxu0 %v268_v58  ;;  %799 = vmatprep.mubr.f32.mxu1 %v307_v63  ;;  %v332_v58 = vld [vmem:[%s2319_s10 + $0x2a0] sm:$0xff]  ;;  %v371_v63 = vld [vmem:[%s2319_s10 + $0x3d8] sm:$0xff] }
  0xc1   : > { %534 = vmatprep.mubr.f32.mxu0 %v273_v60  ;;  %1709 = vmatpush1.bf16.msra.mxu0 %v2357_v42  ;;  %v310_v42 = vld [vmem:[%s2319_s10 + $0x1f0] sm:$0xff]  ;;  %v337_v60 = vld [vmem:[%s2319_s10 + $0x2c8] sm:$0xff] }
  0xc2   : > { %1710 = vmatprep.subr.bf16.mxu0 %v2115_v0 }
  0xc3   : > { %800 = vmatmul.mubr.f32.gmra.mrb[10].mxu1 %v306_v36  ;;  %v370_v36 = vld [vmem:[%s2319_s10 + $0x3d0] sm:$0xff] }
  0xc4   : > { %535 = vmatmul.mubr.f32.gmra.mrb[12].mxu0 %v272_v62  ;;  %804 = vmatprep.mubr.f32.mxu1 %v311_v3  ;;  %v336_v62 = vld [vmem:[%s2319_s10 + $0x2c0] sm:$0xff]  ;;  %v375_v3 = vld [vmem:[%s2319_s10 + $0x3f8] sm:$0xff] }
  0xc5   : > { %539 = vmatprep.mubr.f32.mxu0 %v277_v1  ;;  %1712 = vmatpush1.bf16.msra.mxu0 %v2363_v49  ;;  %v314_v49 = vld [vmem:[%s2319_s10 + $0x210] sm:$0xff]  ;;  %v341_v1 = vld [vmem:[%s2319_s10 + $0x2e8] sm:$0xff] }
  0xc6   : > { %1713 = vmatprep.subr.bf16.mxu0 %v2115_v0 }
  0xc7   : > { %805 = vmatmul.mubr.f32.gmra.mrb[12].mxu1 %v310_v42  ;;  %v374_v42 = vld [vmem:[%s2319_s10 + $0x3f0] sm:$0xff] }
  0xc8   : > { %540 = vmatmul.mubr.f32.gmra.mrb[14].mxu0 %v276_v2  ;;  %809 = vmatprep.mubr.f32.mxu1 %v315_v7  ;;  %v340_v2 = vld [vmem:[%s2319_s10 + $0x2e0] sm:$0xff]  ;;  %v349_v7 = vld [vmem:[%s2319_s10 + $0x328] sm:$0xff] }
  0xc9   : > { %544 = vmatprep.mubr.f32.mxu0 %v281_v5  ;;  %1715 = vmatpush1.bf16.msra.mxu0 %v2368_v55  ;;  %v318_v55 = vld [vmem:[%s2319_s10 + $0x230] sm:$0xff]  ;;  %v345_v5 = vld [vmem:[%s2319_s10 + $0x308] sm:$0xff] }
  0xca   : > { %1716 = vmatprep.subr.bf16.mxu0 %v2115_v0 }
  0xcb   : > { %810 = vmatmul.mubr.f32.gmra.mrb[14].mxu1 %v314_v49  ;;  %v353_v49 = vld [vmem:[%s2319_s10 + $0x348] sm:$0xff] }
  0xcc   : > { %545 = vmatmul.mubr.f32.gmra.mrb[16].mxu0 %v280_v6  ;;  %814 = vmatprep.mubr.f32.mxu1 %v319_v11  ;;  %v344_v6 = vld [vmem:[%s2319_s10 + $0x300] sm:$0xff]  ;;  %v357_v11 = vld [vmem:[%s2319_s10 + $0x368] sm:$0xff] }
  0xcd   : > { %549 = vmatprep.mubr.f32.mxu0 %v285_v8  ;;  %1718 = vmatpush1.bf16.msra.mxu0 %v2373_v61  ;;  %v322_v61 = vld [vmem:[%s2319_s10 + $0x250] sm:$0xff]  ;;  %v348_v8 = vld [vmem:[%s2319_s10 + $0x320] sm:$0xff] }
  0xce   : > { %1719 = vmatprep.subr.bf16.mxu0 %v2115_v0 }
  0xcf   : > { %815 = vmatmul.mubr.f32.gmra.mrb[16].mxu1 %v318_v55  ;;  %v361_v55 = vld [vmem:[%s2319_s10 + $0x388] sm:$0xff] }
  0xd0   : > { %550 = vmatmul.mubr.f32.gmra.mrb[18].mxu0 %v284_v9  ;;  %819 = vmatprep.mubr.f32.mxu1 %v323_v15  ;;  %v352_v9 = vld [vmem:[%s2319_s10 + $0x340] sm:$0xff]  ;;  %v365_v15 = vld [vmem:[%s2319_s10 + $0x3a8] sm:$0xff] }
  0xd1   : > { %554 = vmatprep.mubr.f32.mxu0 %v289_v12  ;;  %1721 = vmatpush1.bf16.msra.mxu0 %v2378_v4  ;;  %v326_v4 = vld [vmem:[%s2319_s10 + $0x270] sm:$0xff]  ;;  %v356_v12 = vld [vmem:[%s2319_s10 + $0x360] sm:$0xff] }
  0xd2   : > { %1722 = vmatprep.subr.bf16.mxu0 %v2115_v0 }
  0xd3   : > { %820 = vmatmul.mubr.f32.gmra.mrb[18].mxu1 %v322_v61  ;;  %v369_v61 = vld [vmem:[%s2319_s10 + $0x3c8] sm:$0xff] }
  0xd4   : > { %555 = vmatmul.mubr.f32.gmra.mrb[20].mxu0 %v288_v13  ;;  %824 = vmatprep.mubr.f32.mxu1 %v327_v20  ;;  %v360_v13 = vld [vmem:[%s2319_s10 + $0x380] sm:$0xff]  ;;  %v373_v20 = vld [vmem:[%s2319_s10 + $0x3e8] sm:$0xff] }
  0xd5   : > { %559 = vmatprep.mubr.f32.mxu0 %v293_v16  ;;  %1724 = vmatpush1.bf16.msra.mxu0 %v2383_v10  ;;  %v330_v10 = vld [vmem:[%s2319_s10 + $0x290] sm:$0xff]  ;;  %v364_v16 = vld [vmem:[%s2319_s10 + $0x3a0] sm:$0xff] }
  0xd6   : > { %1725 = vmatprep.subr.bf16.mxu0 %v2115_v0 }
  0xd7   : > { %825 = vmatmul.mubr.f32.gmra.mrb[20].mxu1 %v326_v4  ;;  %v251_v4 = vld [vmem:[%s2319_s10 + $0x18] sm:$0xff] }
  0xd8   : > { %560 = vmatmul.mubr.f32.gmra.mrb[22].mxu0 %v292_v19  ;;  %829 = vmatprep.mubr.f32.mxu1 %v331_v24  ;;  %v368_v19 = vld [vmem:[%s2319_s10 + $0x3c0] sm:$0xff]  ;;  %v255_v24 = vld [vmem:[%s2319_s10 + $0x38] sm:$0xff] }
  0xd9   : > { %564 = vmatprep.mubr.f32.mxu0 %v297_v21  ;;  %1727 = vmatpush1.bf16.msra.mxu0 %v2388_v18  ;;  %v334_v18 = vld [vmem:[%s2319_s10 + $0x2b0] sm:$0xff]  ;;  %v372_v21 = vld [vmem:[%s2319_s10 + $0x3e0] sm:$0xff] }
  0xda   : > { %1728 = vmatprep.subr.bf16.mxu0 %v2115_v0 }
  0xdb   : > { %830 = vmatmul.mubr.f32.gmra.mrb[22].mxu1 %v330_v10  ;;  %v259_v10 = vld [vmem:[%s2319_s10 + $0x58] sm:$0xff] }
  0xdc   : > { %565 = vmatmul.mubr.f32.gmra.mrb[24].mxu0 %v296_v22  ;;  %834 = vmatprep.mubr.f32.mxu1 %v335_v28  ;;  %v250_v22 = vld [vmem:[%s2319_s10 + $0x10] sm:$0xff]  ;;  %v263_v28 = vld [vmem:[%s2319_s10 + $0x78] sm:$0xff] }
  0xdd   : > { %569 = vmatprep.mubr.f32.mxu0 %v301_v26  ;;  %1730 = vmatpush1.bf16.msra.mxu0 %v2393_v25  ;;  %v338_v25 = vld [vmem:[%s2319_s10 + $0x2d0] sm:$0xff] }
  0xde   : > { %1731 = vmatprep.subr.bf16.mxu0 %v2115_v0  ;;  %v254_v26 = vld [vmem:[%s2319_s10 + $0x30] sm:$0xff] }
  0xdf   : > { %835 = vmatmul.mubr.f32.gmra.mrb[24].mxu1 %v334_v18  ;;  %v267_v18 = vld [vmem:[%s2319_s10 + $0x98] sm:$0xff] }
  0xe0   : > { %570 = vmatmul.mubr.f32.gmra.mrb[26].mxu0 %v300_v27  ;;  %839 = vmatprep.mubr.f32.mxu1 %v339_v33  ;;  %v258_v27 = vld [vmem:[%s2319_s10 + $0x50] sm:$0xff]  ;;  %v271_v33 = vld [vmem:[%s2319_s10 + $0xb8] sm:$0xff] }
  0xe1   : > { %574 = vmatprep.mubr.f32.mxu0 %v305_v29  ;;  %1733 = vmatpush1.bf16.msra.mxu0 %v2398_v32  ;;  %v342_v32 = vld [vmem:[%s2319_s10 + $0x2f0] sm:$0xff] }
  0xe2   : > { %1734 = vmatprep.subr.bf16.mxu0 %v2115_v0  ;;  %v262_v29 = vld [vmem:[%s2319_s10 + $0x70] sm:$0xff] }
  0xe3   : > { %840 = vmatmul.mubr.f32.gmra.mrb[26].mxu1 %v338_v25  ;;  %v955_v25 = vld [vmem:[#allocation7 + $0x8] sm:$0xff] }
  0xe4   : > { %575 = vmatmul.mubr.f32.gmra.mrb[28].mxu0 %v304_v31  ;;  %844 = vmatprep.mubr.f32.mxu1 %v343_v38  ;;  %v266_v31 = vld [vmem:[%s2319_s10 + $0x90] sm:$0xff] }
  0xe5   : > { %579 = vmatprep.mubr.f32.mxu0 %v309_v34  ;;  %1736 = vmatpush1.bf16.msra.mxu0 %v2403_v37  ;;  %v316_v37 = vld [vmem:[%s2319_s10 + $0x220] sm:$0xff] }
  0xe6   : > { %1737 = vmatprep.subr.bf16.mxu0 %v2115_v0  ;;  %v346_v0 = vld [vmem:[%s2319_s10 + $0x310] sm:$0xff]  ;;  %v954_v34 = vld [vmem:[#allocation7] sm:$0xff] }
  0xe7   : > { %845 = vmatmul.mubr.f32.gmra.mrb[28].mxu1 %v342_v32  ;;  %v1740_v38 = vpack.c.bf16 %v955_v25, %v954_v34  ;;  %v274_v32 = vld [vmem:[%s2319_s10 + $0xd0] sm:$0xff] }
  0xe8   : > { %580 = vmatmul.mubr.f32.gmra.mrb[30].mxu0 %v308_v35  ;;  %849 = vmatprep.mubr.f32.mxu1 %v347_v41  ;;  %v270_v35 = vld [vmem:[%s2319_s10 + $0xb0] sm:$0xff] }
  0xe9   : > { %584 = vmatprep.mubr.f32.mxu0 %v313_v39  ;;  %1739 = vmatpush1.bf16.msra.mxu0 %v2410_v43  ;;  %v320_v43 = vld [vmem:[%s2319_s10 + $0x240] sm:$0xff]  ;;  %v275_v39 = vld [vmem:[%s2319_s10 + $0xd8] sm:$0xff]  ;;  %v278_v41 = vld [vmem:[%s2319_s10 + $0xf0] sm:$0xff] }
  0xea   : > { %1741 = vmatprep.subr.bf16.mxu1 %v1740_v38 }
  0xeb   : > { %850 = vmatmul.mubr.f32.gmra.mrb[30].mxu1 %v346_v0  ;;  %v956_v0 = vld [vmem:[#allocation7 + $0x10] sm:$0xff] }
  0xec   : > { %585 = vmatmul.mubr.f32.gmra.mrb[32].mxu0 %v312_v40  ;;  %854 = vmatprep.mubr.f32.mxu1 %v351_v45  ;;  %v279_v40 = vld [vmem:[%s2319_s10 + $0xf8] sm:$0xff]  ;;  %v282_v45 = vld [vmem:[%s2319_s10 + $0x110] sm:$0xff] }
  0xed   : > { %589 = vmatprep.mubr.f32.mxu0 %v317_v44  ;;  %1743 = vmatpush3.bf16.msra.mxu1 %v1740_v38  ;;  %v283_v44 = vld [vmem:[%s2319_s10 + $0x118] sm:$0xff] }
  0xef   : > { %855 = vmatmul.mubr.f32.gmra.mrb[32].mxu1 %v350_v47  ;;  %v958_v47 = vld [vmem:[#allocation7 + $0x20] sm:$0xff] }
  0xf0   : > { %590 = vmatmul.mubr.f32.gmra.mrb[34].mxu0 %v316_v37  ;;  %859 = vmatprep.mubr.f32.mxu1 %v355_v14  ;;  %v957_v37 = vld [vmem:[#allocation7 + $0x18] sm:$0xff] }
  0xf1   : > { %594 = vmatprep.mubr.f32.mxu0 %v321_v46  ;;  %v1744_v46 = vpack.c.bf16 %v957_v37, %v956_v0 }
  0xf3   : > { %860 = vmatmul.mubr.f32.gmra.mrb[34].mxu1 %v354_v50  ;;  %1745 = vmatprep.subr.bf16.mxu1 %v1744_v46  ;;  %v961_v50 = vld [vmem:[#allocation7 + $0x38] sm:$0xff] }
  0xf4   : > { %595 = vmatmul.mubr.f32.gmra.mrb[36].mxu0 %v320_v43  ;;  %864 = vmatprep.mubr.f32.mxu1 %v359_v52  ;;  %v959_v43 = vld [vmem:[#allocation7 + $0x28] sm:$0xff]  ;;  %v962_v52 = vld [vmem:[#allocation7 + $0x40] sm:$0xff] }
  0xf5   : > { %599 = vmatprep.mubr.f32.mxu0 %v325_v48  ;;  %1747 = vmatpush3.bf16.msra.mxu1 %v1744_v46  ;;  %v1748_v14 = vpack.c.bf16 %v959_v43, %v958_v47  ;;  %v960_v48 = vld [vmem:[#allocation7 + $0x30] sm:$0xff] }
  0xf7   : > { %865 = vmatmul.mubr.f32.gmra.mrb[36].mxu1 %v358_v17  ;;  %1749 = vmatprep.subr.bf16.mxu1 %v1748_v14 }
  0xf8   : > { %600 = vmatmul.mubr.f32.gmra.mrb[38].mxu0 %v324_v51  ;;  %869 = vmatprep.mubr.f32.mxu1 %v363_v56  ;;  %v1752_v51 = vpack.c.bf16 %v961_v50, %v960_v48  ;;  %v965_v56 = vld [vmem:[#allocation7 + $0x58] sm:$0xff] }
  0xf9   : > { %604 = vmatprep.mubr.f32.mxu0 %v329_v53  ;;  %1751 = vmatpush3.bf16.msra.mxu1 %v1748_v14  ;;  %v963_v53 = vld [vmem:[#allocation7 + $0x48] sm:$0xff] }
  0xfa   : > { %1753 = vmatprep.subr.bf16.mxu1 %v1752_v51  ;;  %v1756_v17 = vpack.c.bf16 %v963_v53, %v962_v52 }
  0xfb   : > { %870 = vmatmul.mubr.f32.gmra.mrb[38].mxu1 %v362_v23  ;;  %v966_v23 = vld [vmem:[#allocation7 + $0x60] sm:$0xff] }
  0xfc   : > { %605 = vmatmul.mubr.f32.gmra.mrb[40].mxu0 %v328_v54  ;;  %874 = vmatprep.mubr.f32.mxu1 %v367_v59  ;;  %v964_v54 = vld [vmem:[#allocation7 + $0x50] sm:$0xff] }
  0xfd   : > { %609 = vmatprep.mubr.f32.mxu0 %v333_v57  ;;  %1755 = vmatpush3.bf16.msra.mxu1 %v1752_v51  ;;  %v1760_v57 = vpack.c.bf16 %v965_v56, %v964_v54 }
  0xfe   : > { %1757 = vmatprep.subr.bf16.mxu1 %v1756_v17 }
  0xff   : > { %875 = vmatmul.mubr.f32.gmra.mrb[40].mxu1 %v366_v30  ;;  %v969_v30 = vld [vmem:[#allocation7 + $0x78] sm:$0xff] }
 0x100   : > { %610 = vmatmul.mubr.f32.gmra.mrb[42].mxu0 %v332_v58  ;;  %879 = vmatprep.mubr.f32.mxu1 %v371_v63  ;;  %v967_v58 = vld [vmem:[#allocation7 + $0x68] sm:$0xff] }
 0x101   : > { %614 = vmatprep.mubr.f32.mxu0 %v337_v60  ;;  %1759 = vmatpush3.bf16.msra.mxu1 %v1756_v17  ;;  %v1764_v59 = vpack.c.bf16 %v967_v58, %v966_v23  ;;  %v968_v60 = vld [vmem:[#allocation7 + $0x70] sm:$0xff] }
 0x102   : > { %1761 = vmatprep.subr.bf16.mxu1 %v1760_v57 }
 0x103   : > { %880 = vmatmul.mubr.f32.gmra.mrb[42].mxu1 %v370_v36 }
 0x104   : > { %615 = vmatmul.mubr.f32.gmra.mrb[44].mxu0 %v336_v62  ;;  %884 = vmatprep.mubr.f32.mxu1 %v375_v3  ;;  %v1768_v62 = vpack.c.bf16 %v969_v30, %v968_v60 }
 0x105   : > { %619 = vmatprep.mubr.f32.mxu0 %v341_v1  ;;  %1763 = vmatpush3.bf16.msra.mxu1 %v1760_v57 }
 0x106   : > { %1765 = vmatprep.subr.bf16.mxu1 %v1764_v59 }
 0x107   : > { %885 = vmatmul.mubr.f32.gmra.mrb[44].mxu1 %v374_v42 }
 0x108   : > { %620 = vmatmul.mubr.f32.gmra.mrb[46].mxu0 %v340_v2 }
 0x109   : > { %624 = vmatprep.mubr.f32.mxu0 %v345_v5  ;;  %1767 = vmatpush3.bf16.msra.mxu1 %v1764_v59 }
 0x10a   : > { %1769 = vmatprep.subr.bf16.mxu1 %v1768_v62 }
 0x10c   : > { %625 = vmatmul.mubr.f32.gmra.mrb[48].mxu0 %v344_v6 }
 0x10d   : > { %629 = vmatprep.mubr.f32.mxu0 %v349_v7  ;;  %1771 = vmatpush3.bf16.msra.mxu1 %v1768_v62 }
 0x110   : > { %630 = vmatmul.mubr.f32.gmra.mrb[50].mxu0 %v348_v8 }
 0x111   : > { %634 = vmatprep.mubr.f32.mxu0 %v353_v49 }
 0x114   : > { %635 = vmatmul.mubr.f32.gmra.mrb[52].mxu0 %v352_v9 }
 0x115   : > { %639 = vmatprep.mubr.f32.mxu0 %v357_v11 }
 0x118   : > { %640 = vmatmul.mubr.f32.gmra.mrb[54].mxu0 %v356_v12 }
 0x119   : > { %644 = vmatprep.mubr.f32.mxu0 %v361_v55 }
 0x11c   : > { %645 = vmatmul.mubr.f32.gmra.mrb[56].mxu0 %v360_v13 }
 0x11d   : > { %649 = vmatprep.mubr.f32.mxu0 %v365_v15 }
 0x120   : > { %650 = vmatmul.mubr.f32.gmra.mrb[58].mxu0 %v364_v16 }
 0x121   : > { %654 = vmatprep.mubr.f32.mxu0 %v369_v61 }
 0x124   : > { %655 = vmatmul.mubr.f32.gmra.mrb[60].mxu0 %v368_v19 }
 0x125   : > { %659 = vmatprep.mubr.f32.mxu0 %v373_v20 }
 0x128   : > { %660 = vmatmul.mubr.f32.gmra.mrb[62].mxu0 %v372_v21 }
 0x129   : > { %729 = vmatprep.mubr.f32.mxu0 %v251_v4 }
 0x12c   : > { %730 = vmatmul.mubr.f32.vlgmr.msra.gmra.mrb[0].mxu0 %v250_v22 }
 0x12d   : > { %734 = vmatprep.mubr.f32.mxu0 %v255_v24 }
 0x130   : > { %735 = vmatmul.mubr.f32.gmra.mrb[2].mxu0 %v254_v26 }
 0x131   : > { %739 = vmatprep.mubr.f32.mxu0 %v259_v10 }
 0x134   : > { %740 = vmatmul.mubr.f32.gmra.mrb[4].mxu0 %v258_v27 }
 0x135   : > { %744 = vmatprep.mubr.f32.mxu0 %v263_v28 }
 0x138   : > { %745 = vmatmul.mubr.f32.gmra.mrb[6].mxu0 %v262_v29 }
 0x139   : > { %749 = vmatprep.mubr.f32.mxu0 %v267_v18 }
 0x13c   : > { %750 = vmatmul.mubr.f32.gmra.mrb[8].mxu0 %v266_v31 }
 0x13d   : > { %754 = vmatprep.mubr.f32.mxu0 %v271_v33 }
 0x140   : > { %755 = vmatmul.mubr.f32.gmra.mrb[10].mxu0 %v270_v35 }
 0x141   : > { %759 = vmatprep.mubr.f32.mxu0 %v275_v39 }
 0x144   : > { %760 = vmatmul.mubr.f32.gmra.mrb[12].mxu0 %v274_v32 }
 0x145   : > { %764 = vmatprep.mubr.f32.mxu0 %v279_v40 }
 0x148   : > { %765 = vmatmul.mubr.f32.gmra.mrb[14].mxu0 %v278_v41 }
 0x149   : > { %769 = vmatprep.mubr.f32.mxu0 %v283_v44 }
 0x14c   : > { %770 = vmatmul.mubr.f32.gmra.mrb[16].mxu0 %v282_v45 }
 0x182   : > { %v776_v63 = vpop.f32.mrb[0].mxu1 }
 0x183   : > { %v778_v1 = vpop.f32.mrb[1].mxu1 }
 0x186   : > { %v781_v36 = vpop.f32.mrb[2].mxu1 }
 0x187   : > { %v783_v2 = vpop.f32.mrb[3].mxu1 }
 0x18a   : > { %v786_v3 = vpop.f32.mrb[4].mxu1 }
 0x18b   : > { %v788_v5 = vpop.f32.mrb[5].mxu1 }
 0x18e   : > { %v791_v42 = vpop.f32.mrb[6].mxu1 }
 0x18f   : > { %v793_v6 = vpop.f32.mrb[7].mxu1 }
 0x192   : > { %v796_v7 = vpop.f32.mrb[8].mxu1 }
 0x193   : > { %v798_v8 = vpop.f32.mrb[9].mxu1 }
 0x196   : > { %v801_v49 = vpop.f32.mrb[10].mxu1 }
 0x197   : > { %v803_v9 = vpop.f32.mrb[11].mxu1 }
 0x19a   : > { %v806_v11 = vpop.f32.mrb[12].mxu1 }
 0x19b   : > { %v808_v12 = vpop.f32.mrb[13].mxu1 }
 0x19e   : > { %v811_v55 = vpop.f32.mrb[14].mxu1 }
 0x19f   : > { %v813_v15 = vpop.f32.mrb[15].mxu1 }
 0x1a2   : > { %v816_v19 = vpop.f32.mrb[16].mxu1 }
 0x1a3   : > { %v551_v13 = vpop.f32.mrb[18].mxu0  ;;  %v818_v21 = vpop.f32.mrb[17].mxu1 }
 0x1a4   : > { %v2569_v16 = vadd.f32 %v776_v63, %v551_v13  ;;  %v553_v61 = vpop.f32.mrb[19].mxu0 }
 0x1a6   : > { %v821_v24 = vpop.f32.mrb[18].mxu1 }
 0x1a7   : > { %v556_v20 = vpop.f32.mrb[20].mxu0  ;;  %v823_v10 = vpop.f32.mrb[19].mxu1 }
 0x1a8   : > { %v2571_v4 = vadd.f32 %v781_v36, %v556_v20  ;;  %v558_v22 = vpop.f32.mrb[21].mxu0 }
 0x1aa   : > { %v826_v29 = vpop.f32.mrb[20].mxu1 }
 0x1ab   : > { %v561_v26 = vpop.f32.mrb[22].mxu0  ;;  %v828_v31 = vpop.f32.mrb[21].mxu1 }
 0x1ac   : > { %v2573_v27 = vadd.f32 %v786_v3, %v561_v26  ;;  %v563_v28 = vpop.f32.mrb[23].mxu0 }
 0x1ae   : > { %v831_v25 = vpop.f32.mrb[22].mxu1 }
 0x1af   : > { %v566_v18 = vpop.f32.mrb[24].mxu0  ;;  %v833_v38 = vpop.f32.mrb[23].mxu1 }
 0x1b0   : > { %v2575_v33 = vadd.f32 %v791_v42, %v566_v18  ;;  %v568_v34 = vpop.f32.mrb[25].mxu0 }
 0x1b2   : > { %v836_v40 = vpop.f32.mrb[24].mxu1 }
 0x1b3   : > { %v571_v35 = vpop.f32.mrb[26].mxu0  ;;  %v838_v44 = vpop.f32.mrb[25].mxu1 }
 0x1b4   : > { %v2577_v39 = vadd.f32 %v796_v7, %v571_v35  ;;  %v573_v32 = vpop.f32.mrb[27].mxu0 }
 0x1b6   : > { %v841_v45 = vpop.f32.mrb[26].mxu1 }
 0x1b7   : > { %v576_v41 = vpop.f32.mrb[28].mxu0  ;;  %v843_v47 = vpop.f32.mrb[27].mxu1 }
 0x1b8   : > { %v2579_v0 = vadd.f32 %v801_v49, %v576_v41  ;;  %v578_v37 = vpop.f32.mrb[29].mxu0 }
 0x1ba   : > { %v846_v48 = vpop.f32.mrb[28].mxu1 }
 0x1bb   : > { %v581_v46 = vpop.f32.mrb[30].mxu0  ;;  %v848_v51 = vpop.f32.mrb[29].mxu1 }
 0x1bc   : > { %v2581_v43 = vadd.f32 %v806_v11, %v581_v46  ;;  %v583_v14 = vpop.f32.mrb[31].mxu0 }
 0x1be   : > { %v851_v17 = vpop.f32.mrb[30].mxu1 }
 0x1bf   : > { %v586_v50 = vpop.f32.mrb[32].mxu0  ;;  %v853_v56 = vpop.f32.mrb[31].mxu1 }
 0x1c0   : > { %v2583_v52 = vadd.f32 %v811_v55, %v586_v50  ;;  %v588_v53 = vpop.f32.mrb[33].mxu0 }
 0x1c2   : > { %v856_v58 = vpop.f32.mrb[32].mxu1 }
 0x1c3   : > { %v591_v54 = vpop.f32.mrb[34].mxu0  ;;  %v858_v60 = vpop.f32.mrb[33].mxu1 }
 0x1c4   : > { %v2585_v57 = vadd.f32 %v816_v19, %v591_v54  ;;  %v593_v23 = vpop.f32.mrb[35].mxu0 }
 0x1c6   : > { %v861_v63 = vpop.f32.mrb[34].mxu1 }
 0x1c7   : > { %v596_v59 = vpop.f32.mrb[36].mxu0  ;;  %v863_v36 = vpop.f32.mrb[35].mxu1 }
 0x1c8   : > { %v2587_v30 = vadd.f32 %v821_v24, %v596_v59  ;;  %v598_v62 = vpop.f32.mrb[37].mxu0 }
 0x1ca   : > { %v866_v5 = vpop.f32.mrb[36].mxu1 }
 0x1cb   : > { %v601_v1 = vpop.f32.mrb[38].mxu0  ;;  %v868_v6 = vpop.f32.mrb[37].mxu1 }
 0x1cc   : > { %v2589_v2 = vadd.f32 %v826_v29, %v601_v1  ;;  %v603_v3 = vpop.f32.mrb[39].mxu0 }
 0x1ce   : > { %v871_v49 = vpop.f32.mrb[38].mxu1 }
 0x1cf   : > { %v606_v42 = vpop.f32.mrb[40].mxu0  ;;  %v873_v11 = vpop.f32.mrb[39].mxu1 }
 0x1d0   : > { %v2591_v7 = vadd.f32 %v831_v25, %v606_v42  ;;  %v608_v8 = vpop.f32.mrb[41].mxu0 }
 0x1d2   : > { %v876_v13 = vpop.f32.mrb[40].mxu1 }
 0x1d3   : > { %v611_v9 = vpop.f32.mrb[42].mxu0  ;;  %v878_v61 = vpop.f32.mrb[41].mxu1 }
 0x1d4   : > { %v2593_v12 = vadd.f32 %v836_v40, %v611_v9  ;;  %v613_v55 = vpop.f32.mrb[43].mxu0 }
 0x1d6   : > { %v881_v21 = vpop.f32.mrb[42].mxu1 }
 0x1d7   : > { %v616_v15 = vpop.f32.mrb[44].mxu0  ;;  %v883_v24 = vpop.f32.mrb[43].mxu1 }
 0x1d8   : > { %v2595_v19 = vadd.f32 %v841_v45, %v616_v15  ;;  %v618_v20 = vpop.f32.mrb[45].mxu0 }
 0x1da   : > { %v886_v28 = vpop.f32.mrb[44].mxu1 }
 0x1db   : > { %v621_v22 = vpop.f32.mrb[46].mxu0  ;;  %v888_v18 = vpop.f32.mrb[45].mxu1 }
 0x1dc   : > { %v2597_v26 = vadd.f32 %v846_v48, %v621_v22  ;;  %v623_v10 = vpop.f32.mrb[47].mxu0 }
 0x1df   : > { %v626_v29 = vpop.f32.mrb[48].mxu0 }
 0x1e0   : > { %v2599_v31 = vadd.f32 %v851_v17, %v626_v29  ;;  %v628_v34 = vpop.f32.mrb[49].mxu0 }
 0x1e3   : > { %v631_v25 = vpop.f32.mrb[50].mxu0 }
 0x1e4   : > { %v2601_v35 = vadd.f32 %v856_v58, %v631_v25  ;;  %v633_v38 = vpop.f32.mrb[51].mxu0 }
 0x1e7   : > { %v636_v32 = vpop.f32.mrb[52].mxu0 }
 0x1e8   : > { %v2603_v40 = vadd.f32 %v861_v63, %v636_v32  ;;  %v638_v41 = vpop.f32.mrb[53].mxu0 }
 0x1eb   : > { %v641_v44 = vpop.f32.mrb[54].mxu0 }
 0x1ec   : > { %v2605_v37 = vadd.f32 %v866_v5, %v641_v44  ;;  %v643_v45 = vpop.f32.mrb[55].mxu0 }
 0x1ed   : > { %v899_v45 = vmul.f32 0.044194173, %v2569_v16 }
 0x1ef   : > { %v646_v46 = vpop.f32.mrb[56].mxu0 }
 0x1f0   : > { %v2607_v47 = vadd.f32 %v871_v49, %v646_v46  ;;  %v648_v14 = vpop.f32.mrb[57].mxu0 }
 0x1f1   : > { %v900_v14 = vmul.f32 0.044194173, %v2571_v4 }
 0x1f3   : > { %v651_v48 = vpop.f32.mrb[58].mxu0 }
 0x1f4   : > { %v2609_v50 = vadd.f32 %v876_v13, %v651_v48  ;;  %v653_v51 = vpop.f32.mrb[59].mxu0 }
 0x1f7   : > { %v656_v53 = vpop.f32.mrb[60].mxu0 }
 0x1f8   : > { %v2611_v17 = vadd.f32 %v881_v21, %v656_v53  ;;  %v658_v54 = vpop.f32.mrb[61].mxu0 }
 0x1f9   : > { %v931_v54 = vmax.f32 %v899_v45, 0.0 }
 0x1fb   : > { %v661_v56 = vpop.f32.mrb[62].mxu0 }
 0x1fc   : > { %v2613_v23 = vadd.f32 %v886_v28, %v661_v56  ;;  %v663_v58 = vpop.f32.mrb[63].mxu0  ;;  %v901_v56 = vmul.f32 0.044194173, %v2573_v27  ;;  %v906_v27 = vmul.f32 0.044194173, %v2583_v52 }
 0x1fd   : > { %v932_v58 = vmax.f32 %v900_v14, 0.0  ;;  %v911_v52 = vmul.f32 0.044194173, %v2593_v12 }
 0x1ff   : > { %v731_v59 = vpop.f32.mrb[0].mxu0 }
 0x200   : > { %v890_v60 = vmul.f32 0.044194173, %v731_v59  ;;  %v733_v62 = vpop.f32.mrb[1].mxu0  ;;  %v902_v59 = vmul.f32 0.044194173, %v2575_v33 }
 0x201   : > { %v903_v62 = vmul.f32 0.044194173, %v2577_v39 }
 0x202   : > { %v922_v63 = vmax.f32 %v890_v60, 0.0  ;;  %v933_v60 = vmax.f32 %v901_v56, 0.0  ;;  %v934_v16 = vmax.f32 %v902_v59, 0.0 }
 0x203   : > { %v736_v1 = vpop.f32.mrb[2].mxu0  ;;  %v935_v4 = vmax.f32 %v903_v62, 0.0 }
 0x204   : > { %v891_v36 = vmul.f32 0.044194173, %v736_v1  ;;  %v738_v3 = vpop.f32.mrb[3].mxu0  ;;  %1596 = vmatprep.mubr.f32.mxu1 %v922_v63  ;;  %v904_v63 = vmul.f32 0.044194173, %v2579_v0 }
 0x205   : > { %v905_v1 = vmul.f32 0.044194173, %v2581_v43  ;;  %v907_v3 = vmul.f32 0.044194173, %v2585_v57  ;;  %v909_v0 = vmul.f32 0.044194173, %v2589_v2 }
 0x206   : > { %v923_v5 = vmax.f32 %v891_v36, 0.0  ;;  %v936_v36 = vmax.f32 %v904_v63, 0.0  ;;  %v943_v57 = vmax.f32 %v911_v52, 0.0 }
 0x207   : > { %v741_v42 = vpop.f32.mrb[4].mxu0  ;;  %v937_v33 = vmax.f32 %v905_v1, 0.0  ;;  %v939_v39 = vmax.f32 %v907_v3, 0.0  ;;  %v941_v43 = vmax.f32 %v909_v0, 0.0 }
 0x208   : > { %v892_v6 = vmul.f32 0.044194173, %v741_v42  ;;  %v743_v8 = vpop.f32.mrb[5].mxu0  ;;  %1597 = vmatmul.mubr.f32.vlgmr.msra.gmra.mrb[46].mxu1 %v923_v5  ;;  %v938_v5 = vmax.f32 %v906_v27, 0.0  ;;  %v908_v42 = vmul.f32 0.044194173, %v2587_v30 }
 0x209   : > { %v910_v8 = vmul.f32 0.044194173, %v2591_v7  ;;  %v913_v30 = vmul.f32 0.044194173, %v2597_v26  ;;  %v915_v7 = vmul.f32 0.044194173, %v2601_v35 }
 0x20a   : > { %v924_v49 = vmax.f32 %v892_v6, 0.0  ;;  %v940_v6 = vmax.f32 %v908_v42, 0.0 }
 0x20b   : > { %v746_v9 = vpop.f32.mrb[6].mxu0  ;;  %v945_v2 = vmax.f32 %v913_v30, 0.0  ;;  %v947_v12 = vmax.f32 %v915_v7, 0.0 }
 0x20c   : > { %v893_v11 = vmul.f32 0.044194173, %v746_v9  ;;  %v748_v55 = vpop.f32.mrb[7].mxu0  ;;  %1599 = vmatprep.mubr.f32.mxu1 %v924_v49  ;;  %v942_v49 = vmax.f32 %v910_v8, 0.0  ;;  %v912_v9 = vmul.f32 0.044194173, %v2595_v19 }
 0x20d   : > { %v914_v55 = vmul.f32 0.044194173, %v2599_v31  ;;  %v917_v19 = vmul.f32 0.044194173, %v2605_v37  ;;  %v919_v31 = vmul.f32 0.044194173, %v2609_v50 }
 0x20e   : > { %v925_v13 = vmax.f32 %v893_v11, 0.0  ;;  %v944_v11 = vmax.f32 %v912_v9, 0.0 }
 0x20f   : > { %v751_v15 = vpop.f32.mrb[8].mxu0  ;;  %v949_v26 = vmax.f32 %v917_v19, 0.0  ;;  %v951_v35 = vmax.f32 %v919_v31, 0.0 }
 0x210   : > { %v894_v61 = vmul.f32 0.044194173, %v751_v15  ;;  %v753_v20 = vpop.f32.mrb[9].mxu0  ;;  %1600 = vmatmul.mubr.f32.gmra.mrb[48].mxu1 %v925_v13  ;;  %v946_v13 = vmax.f32 %v914_v55, 0.0  ;;  %v916_v15 = vmul.f32 0.044194173, %v2603_v40 }
 0x211   : > { %v918_v20 = vmul.f32 0.044194173, %v2607_v47  ;;  %v921_v40 = vmul.f32 0.044194173, %v2613_v23  ;;  %v2641_v47 = vld [vmem:[%s2721_s3] sm:$0x1] }
 0x212   : > { %v926_v21 = vmax.f32 %v894_v61, 0.0  ;;  %v948_v61 = vmax.f32 %v916_v15, 0.0 }
 0x213   : > { %v756_v22 = vpop.f32.mrb[10].mxu0  ;;  %v953_v37 = vmax.f32 %v921_v40, 0.0 }
 0x214   : > { %v895_v24 = vmul.f32 0.044194173, %v756_v22  ;;  %v758_v10 = vpop.f32.mrb[11].mxu0  ;;  %1602 = vmatprep.mubr.f32.mxu1 %v926_v21  ;;  %v950_v21 = vmax.f32 %v918_v20, 0.0  ;;  %v920_v22 = vmul.f32 0.044194173, %v2611_v17 }
 0x216   : > { %v927_v28 = vmax.f32 %v895_v24, 0.0  ;;  %v952_v24 = vmax.f32 %v920_v22, 0.0 }
 0x217   : > { %v761_v29 = vpop.f32.mrb[12].mxu0 }
 0x218   : > { %v896_v18 = vmul.f32 0.044194173, %v761_v29  ;;  %v763_v34 = vpop.f32.mrb[13].mxu0  ;;  %1603 = vmatmul.mubr.f32.gmra.mrb[50].mxu1 %v927_v28 }
 0x21a   : > { %v928_v25 = vmax.f32 %v896_v18, 0.0 }
 0x21b   : > { %v766_v38 = vpop.f32.mrb[14].mxu0 }
 0x21c   : > { %v897_v32 = vmul.f32 0.044194173, %v766_v38  ;;  %v768_v41 = vpop.f32.mrb[15].mxu0  ;;  %1605 = vmatprep.mubr.f32.mxu1 %v928_v25 }
 0x21e   : > { %v929_v44 = vmax.f32 %v897_v32, 0.0 }
 0x21f   : > { %v771_v46 = vpop.f32.mrb[16].mxu0 }
 0x220   : > { %v898_v48 = vmul.f32 0.044194173, %v771_v46  ;;  %v773_v51 = vpop.f32.mrb[17].mxu0  ;;  %1606 = vmatmul.mubr.f32.gmra.mrb[52].mxu1 %v929_v44 }
 0x222   : > { %v930_v53 = vmax.f32 %v898_v48, 0.0 }
 0x224   : > { %1608 = vmatprep.mubr.f32.mxu1 %v930_v53 }
 0x225   : > { %1609 = vmatmul.mubr.f32.gmra.mrb[54].mxu1 %v931_v54 }
 0x226   : > { %1611 = vmatprep.mubr.f32.mxu1 %v932_v58 }
 0x229   : > { %1612 = vmatmul.mubr.f32.gmra.mrb[56].mxu1 %v933_v60 }
 0x22a   : > { %1614 = vmatprep.mubr.f32.mxu1 %v934_v16 }
 0x22d   : > { %1615 = vmatmul.mubr.f32.gmra.mrb[58].mxu1 %v935_v4 }
 0x22e   : > { %1617 = vmatprep.mubr.f32.mxu1 %v936_v36 }
 0x231   : > { %1618 = vmatmul.mubr.f32.gmra.mrb[60].mxu1 %v937_v33 }
 0x232   : > { %1620 = vmatprep.mubr.f32.mxu1 %v938_v5 }
 0x235   : > { %1621 = vmatmul.mubr.f32.gmra.mrb[62].mxu1 %v939_v39 }
 0x236   : > { %1623 = vmatprep.mubr.f32.mxu1 %v940_v6 }
 0x239   : > { %1624 = vmatmul.mubr.f32.gmra.mrb[64].mxu1 %v941_v43 }
 0x23a   : > { %1626 = vmatprep.mubr.f32.mxu1 %v942_v49 }
 0x23d   : > { %1627 = vmatmul.mubr.f32.gmra.mrb[66].mxu1 %v943_v57 }
 0x23e   : > { %1629 = vmatprep.mubr.f32.mxu1 %v944_v11 }
 0x241   : > { %1630 = vmatmul.mubr.f32.gmra.mrb[68].mxu1 %v945_v2 }
 0x242   : > { %1632 = vmatprep.mubr.f32.mxu1 %v946_v13 }
 0x245   : > { %1633 = vmatmul.mubr.f32.gmra.mrb[70].mxu1 %v947_v12 }
 0x246   : > { %1635 = vmatprep.mubr.f32.mxu1 %v948_v61 }
 0x249   : > { %1636 = vmatmul.mubr.f32.gmra.mrb[72].mxu1 %v949_v26 }
 0x24a   : > { %1638 = vmatprep.mubr.f32.mxu1 %v950_v21 }
 0x24d   : > { %1639 = vmatmul.mubr.f32.gmra.mrb[74].mxu1 %v951_v35 }
 0x24e   : > { %1641 = vmatprep.mubr.f32.mxu1 %v952_v24 }
 0x251   : > { %1642 = vmatmul.mubr.f32.gmra.mrb[76].mxu1 %v953_v37 }
 0x252   : > { %1562 = vmatprep.mubr.f32.mxu1 %v2641_v47 }
 0x2db   : > { %v1598_v50 = vpop.f32.mrb[46].mxu1 }
 0x2dc   : > { %v1196_v10 = vmul.f32 0.088388346, %v1598_v50  ;;  %v1036_v17 = vpop.f32.mrb[47].mxu1 }
 0x2dd   : > { %v1195_v28 = vmul.f32 0.088388346, %v1036_v17 }
 0x2de   : > { %v1228_v29 = vmax.f32 %v1196_v10, 0.0 }
 0x2df   : > { %v1227_v18 = vmax.f32 %v1195_v28, 0.0 }
 0x2e1   : > { %v2644_v34 = vpack.c.bf16 %v1228_v29, %v1227_v18 }
 0x2e3   : > { %v1601_v23 = vpop.f32.mrb[48].mxu1 }
 0x2e4   : > { %v1198_v25 = vmul.f32 0.088388346, %v1601_v23  ;;  %v1046_v38 = vpop.f32.mrb[49].mxu1 }
 0x2e5   : > { %v1197_v32 = vmul.f32 0.088388346, %v1046_v38 }
 0x2e6   : > { %v1230_v41 = vmax.f32 %v1198_v25, 0.0 }
 0x2e7   : > { %v1229_v44 = vmax.f32 %v1197_v32, 0.0 }
 0x2e9   : > { %v2646_v45 = vpack.c.bf16 %v1230_v41, %v1229_v44 }
 0x2eb   : > { %v1604_v46 = vpop.f32.mrb[50].mxu1 }
 0x2ec   : > { %v1200_v14 = vmul.f32 0.088388346, %v1604_v46  ;;  %v1056_v48 = vpop.f32.mrb[51].mxu1 }
 0x2ed   : > { %v1199_v51 = vmul.f32 0.088388346, %v1056_v48 }
 0x2ee   : > { %v1232_v53 = vmax.f32 %v1200_v14, 0.0 }
 0x2ef   : > { %v1231_v54 = vmax.f32 %v1199_v51, 0.0 }
 0x2f1   : > { %v2648_v56 = vpack.c.bf16 %v1232_v53, %v1231_v54 }
 0x2f3   : > { %v1607_v58 = vpop.f32.mrb[52].mxu1 }
 0x2f4   : > { %v1202_v59 = vmul.f32 0.088388346, %v1607_v58  ;;  %v1066_v60 = vpop.f32.mrb[53].mxu1 }
 0x2f5   : > { %v1201_v62 = vmul.f32 0.088388346, %v1066_v60 }
 0x2f6   : > { %v1234_v16 = vmax.f32 %v1202_v59, 0.0 }
 0x2f7   : > { %v1233_v63 = vmax.f32 %v1201_v62, 0.0 }
 0x2f8   : > { %v1610_v4 = vpop.f32.mrb[54].mxu1 }
 0x2f9   : > { %v2650_v1 = vpack.c.bf16 %v1234_v16, %v1233_v63  ;;  %v1204_v36 = vmul.f32 0.088388346, %v1610_v4  ;;  %v1076_v27 = vpop.f32.mrb[55].mxu1 }
 0x2fa   : > { %v1203_v33 = vmul.f32 0.088388346, %v1076_v27 }
 0x2fb   : > { %v1236_v3 = vmax.f32 %v1204_v36, 0.0 }
 0x2fc   : > { %v1235_v5 = vmax.f32 %v1203_v33, 0.0  ;;  %v1613_v42 = vpop.f32.mrb[56].mxu1 }
 0x2fd   : > { %v1206_v39 = vmul.f32 0.088388346, %v1613_v42  ;;  %v1086_v0 = vpop.f32.mrb[57].mxu1 }
 0x2fe   : > { %v2652_v6 = vpack.c.bf16 %v1236_v3, %v1235_v5  ;;  %v1205_v8 = vmul.f32 0.088388346, %v1086_v0 }
 0x2ff   : > { %v1238_v43 = vmax.f32 %v1206_v39, 0.0 }
 0x300   : > { %v1237_v52 = vmax.f32 %v1205_v8, 0.0  ;;  %v1616_v49 = vpop.f32.mrb[58].mxu1 }
 0x301   : > { %v1208_v9 = vmul.f32 0.088388346, %v1616_v49  ;;  %v1096_v57 = vpop.f32.mrb[59].mxu1 }
 0x302   : > { %v2654_v30 = vpack.c.bf16 %v1238_v43, %v1237_v52  ;;  %v1207_v11 = vmul.f32 0.088388346, %v1096_v57 }
 0x303   : > { %v1240_v55 = vmax.f32 %v1208_v9, 0.0 }
 0x304   : > { %v1239_v2 = vmax.f32 %v1207_v11, 0.0  ;;  %v1619_v7 = vpop.f32.mrb[60].mxu1 }
 0x305   : > { %v1210_v13 = vmul.f32 0.088388346, %v1619_v7  ;;  %v1106_v15 = vpop.f32.mrb[61].mxu1 }
 0x306   : > { %v2656_v12 = vpack.c.bf16 %v1240_v55, %v1239_v2  ;;  %v1209_v19 = vmul.f32 0.088388346, %v1106_v15 }
 0x307   : > { %v1242_v61 = vmax.f32 %v1210_v13, 0.0 }
 0x308   : > { %v1241_v20 = vmax.f32 %v1209_v19, 0.0  ;;  %v1622_v26 = vpop.f32.mrb[62].mxu1 }
 0x309   : > { %v1212_v31 = vmul.f32 0.088388346, %v1622_v26  ;;  %v1116_v21 = vpop.f32.mrb[63].mxu1 }
 0x30a   : > { %v2658_v22 = vpack.c.bf16 %v1242_v61, %v1241_v20  ;;  %v1211_v35 = vmul.f32 0.088388346, %v1116_v21 }
 0x30b   : > { %v1244_v40 = vmax.f32 %v1212_v31, 0.0 }
 0x30c   : > { %v1243_v24 = vmax.f32 %v1211_v35, 0.0  ;;  %v1625_v37 = vpop.f32.mrb[64].mxu1 }
 0x30d   : > { %v1214_v50 = vmul.f32 0.088388346, %v1625_v37  ;;  %v1126_v10 = vpop.f32.mrb[65].mxu1 }
 0x30e   : > { %v1772_v17 = vpack.c.bf16 %v1244_v40, %v1243_v24  ;;  %v1213_v28 = vmul.f32 0.088388346, %v1126_v10 }
 0x30f   : > { %v1246_v29 = vmax.f32 %v1214_v50, 0.0 }
 0x310   : > { %v1245_v18 = vmax.f32 %v1213_v28, 0.0  ;;  %v1628_v23 = vpop.f32.mrb[66].mxu1  ;;  %1773 = vmatprep.subr.bf16.mxu1 %v1772_v17 }
 0x311   : > { %v1216_v25 = vmul.f32 0.088388346, %v1628_v23  ;;  %v1136_v38 = vpop.f32.mrb[67].mxu1  ;;  %1775 = vmatpush3.bf16.xpose.msra.mxu1 %v2644_v34 }
 0x312   : > { %v1776_v32 = vpack.c.bf16 %v1246_v29, %v1245_v18  ;;  %v1215_v41 = vmul.f32 0.088388346, %v1136_v38 }
 0x313   : > { %v1248_v44 = vmax.f32 %v1216_v25, 0.0 }
 0x314   : > { %v1247_v46 = vmax.f32 %v1215_v41, 0.0  ;;  %v1631_v14 = vpop.f32.mrb[68].mxu1  ;;  %1777 = vmatprep.subr.bf16.mxu1 %v1776_v32 }
 0x315   : > { %v1218_v48 = vmul.f32 0.088388346, %v1631_v14  ;;  %v1146_v51 = vpop.f32.mrb[69].mxu1 }
 0x316   : > { %v1780_v53 = vpack.c.bf16 %v1248_v44, %v1247_v46  ;;  %v1217_v54 = vmul.f32 0.088388346, %v1146_v51 }
 0x317   : > { %v1250_v58 = vmax.f32 %v1218_v48, 0.0 }
 0x318   : > { %v1249_v59 = vmax.f32 %v1217_v54, 0.0  ;;  %v1634_v60 = vpop.f32.mrb[70].mxu1 }
 0x319   : > { %v1220_v62 = vmul.f32 0.088388346, %v1634_v60  ;;  %v1156_v16 = vpop.f32.mrb[71].mxu1  ;;  %1779 = vmatpush3.bf16.xpose.msra.mxu1 %v2646_v45 }
 0x31a   : > { %v1784_v63 = vpack.c.bf16 %v1250_v58, %v1249_v59  ;;  %v1219_v4 = vmul.f32 0.088388346, %v1156_v16  ;;  %1781 = vmatprep.subr.bf16.mxu1 %v1780_v53 }
 0x31b   : > { %v1252_v34 = vmax.f32 %v1220_v62, 0.0 }
 0x31c   : > { %v1251_v36 = vmax.f32 %v1219_v4, 0.0  ;;  %v1637_v27 = vpop.f32.mrb[72].mxu1 }
 0x31d   : > { %v1222_v33 = vmul.f32 0.088388346, %v1637_v27  ;;  %v1166_v3 = vpop.f32.mrb[73].mxu1 }
 0x31e   : > { %v1788_v5 = vpack.c.bf16 %v1252_v34, %v1251_v36  ;;  %v1221_v42 = vmul.f32 0.088388346, %v1166_v3 }
 0x31f   : > { %v1254_v39 = vmax.f32 %v1222_v33, 0.0 }
 0x320   : > { %v1253_v0 = vmax.f32 %v1221_v42, 0.0  ;;  %v1640_v8 = vpop.f32.mrb[74].mxu1 }
 0x321   : > { %v1224_v43 = vmul.f32 0.088388346, %v1640_v8  ;;  %v1176_v52 = vpop.f32.mrb[75].mxu1  ;;  %1783 = vmatpush3.bf16.xpose.msra.mxu1 %v2648_v56  ;;  %v2116_v56 = vmov 1966171168  }
 0x322   : > { %v1792_v49 = vpack.c.bf16 %v1254_v39, %v1253_v0  ;;  %v1223_v9 = vmul.f32 0.088388346, %v1176_v52  ;;  %1785 = vmatprep.subr.bf16.mxu1 %v1784_v63  ;;  %v1337_v20 = vunpack.c.l.s4 %v2116_v56 }
 0x323   : > { %v1256_v45 = vmax.f32 %v1224_v43, 0.0 }
 0x324   : > { %v1255_v57 = vmax.f32 %v1223_v9, 0.0  ;;  %v1643_v11 = vpop.f32.mrb[76].mxu1  ;;  %v1338_v26 = vunpack.c.0.s8 %v1337_v20 }
 0x325   : > { %v1226_v55 = vmul.f32 0.088388346, %v1643_v11  ;;  %v1186_v2 = vpop.f32.mrb[77].mxu1 }
 0x326   : > { %v1796_v7 = vpack.c.bf16 %v1256_v45, %v1255_v57  ;;  %v1225_v13 = vmul.f32 0.088388346, %v1186_v2 }
 0x327   : > { %v1258_v15 = vmax.f32 %v1226_v55, 0.0 }
 0x328   : > { %v1257_v19 = vmax.f32 %v1225_v13, 0.0 }
 0x329   : > { %1787 = vmatpush3.bf16.xpose.msra.mxu1 %v2650_v1  ;;  %v1339_v1 = vlaneseq }
 0x32a   : > { %v1800_v61 = vpack.c.bf16 %v1258_v15, %v1257_v19  ;;  %1789 = vmatprep.subr.bf16.mxu1 %v1788_v5 }
 0x32b   : > { %v1340_v31 = vshrl.u32 %v1339_v1, 7  ;;  %vm1353_vm0 = vcmp.lt.s32.totalorder %v1339_v1, 256 }
 0x32d   : > { %v1341_v40 = vsub.s32 %v1338_v26, %v1340_v31 }
 0x331   : > { %1791 = vmatpush3.bf16.xpose.msra.mxu1 %v2652_v6 }
 0x332   : > { %1793 = vmatprep.subr.bf16.mxu1 %v1792_v49 }
 0x339   : > { %1795 = vmatpush3.bf16.xpose.msra.mxu1 %v2654_v30 }
 0x33a   : > { %1797 = vmatprep.subr.bf16.mxu1 %v1796_v7 }
 0x341   : > { %1799 = vmatpush3.bf16.xpose.msra.mxu1 %v2656_v12 }
 0x342   : > { %1801 = vmatprep.subr.bf16.mxu1 %v1800_v61 }
 0x349   : > { %1803 = vmatpush3.bf16.xpose.msra.mxu1 %v2658_v22 }
 0x350   : > { %1563 = vmatmul.mubr.f32.vlgmr.msra.gmra.mrb[78].mxu1 %v2641_v47 }
 0x423   : > { %v1326_v6 = vpop.f32.mrb[78].mxu1 }
 0x424   : > { %v1331_v21 = vmul.f32 0.088388346, %v1326_v6  ;;  %v1328_v35 = vpop.f32.mrb[79].mxu1 }
 0x425   : > { %v1332_v30 = vmul.f32 0.088388346, %v1328_v35 }
 0x427   : > { %v1335_v12 = vcombine.low %v1331_v21, %v1332_v30 }
 0x429   : > { %v1342_v22 = vrot.slane %v1335_v12, %v1341_v40 }
 0x42b   : > { %v1349_v47 = vrot.slane %v1342_v22, %v1341_v40 }
 0x42d   : > { %1355 = vst.msk [vmem:[%s245_s5] sm:$0x3] %vm1353_vm0, %v1349_v47 }
 0x42e   : > { %2049 = shalt.err (!%p2046_p2)
}
 0x42f   : > { %s2050_s7 = scalar_lea.hbm %s2674_s28, 32  ;;  %s2054_s10 = scalar_lea.hbm %s2722_s4, 64 }
 0x430   : > { %p2051_p13 = scmp.ne.s32.totalorder %s2674_s28, %s2050_s7  ;;  %p2055_p4 = scmp.lt.u32.totalorder %s2674_s28, %s2722_s4 }
 0x431   : > { %p2056_p5 = scmp.lt.u32.totalorder %s2054_s10, %s2050_s7  ;;  %p2058_p11 = scmp.lt.u32.totalorder %s2050_s7, %s2674_s28 }
 0x432   : > { %p2052_p6 = pnand %p2051_p13, %p2736_p0 }
 0x433   : > { %p2057_p8 = por %p2056_p5, %p2055_p4 }
 0x434   : > { %p2053_p10 = pneg %p2052_p6 }
 0x435   : > { %p2059_p1 = por %p2058_p11, %p2057_p8 }
 0x437   : > { %p2060_p3 = pnand %p2059_p1, %p2053_p10 }
 0x439   : > { %2063 = shalt.err (!%p2060_p3)
}
 0x43a   : > { %1887 = dma.vmem_to_hbm [thread:$0]  (%p2736_p0), %s2676_s6, 32, %s2674_s28, %s1357_s11  }
 0x43b PF: > { %s1383_s27 = sand.u32 1, %s2094_s15   ;;  %p2737_p7 = scmp.ne.s32.totalorder %s2727_s22, 0 }
 0x43c   : > { %p2738_p9 = scmp.ge.s32.totalorder %s2106_s18, 2  ;;  %s1384_s30 = scalar_lea.sflag [#allocation4], %s1383_s27 }
 0x43e   : > { %p1901_p12 = pnand %p2738_p9, %p2737_p7 }
 0x440   : > { %2089 = dma.done.wait (!%p1901_p12), %s1384_s30, 32  }
 0x441   : > { %2091 = vsyncadd (!%p1901_p12), %s1384_s30, 4294967264  ;;  %p18_p2 = scmp.ge.s32.totalorder %s2253_s9, 4   ;;  %s2739_s15 = smov %s2098_s16 }
 0x442   : > { %s2740_s16 = smov %s2102_s17  ;;  %s2741_s17 = smov %s2269_s14 }
 0x443   : > { %s2742_s18 = smov %s2253_s9  ;;  %20 = sbr.rel (!%p18_p2) target bundleno = 6 (0x6), region = 89 }
 0x44a   :  { %1389 = vsyncpa [#allocation3], 1 }
 0x44b   :  { %1391 = vsyncpa [#allocation3 + $0x1], 1 }
 0x44c   :  { %1392 = vsyncpa [#allocation6], 1 }
 0x44d   :  { %1393 = vsyncpa [#allocation4], 1 }
 0x44e   :  { %1395 = vsyncpa [#allocation4 + $0x1], 1 }

</bundles_post_ra>
